<compile_context>
chip_gen: v7x
topology: tpu7x:2x2x1
jax: 0.10.0
libtpu: 0.0.40
codegen_flags: <defaults>
</compile_context>

<pallas_src>
import jax
import jax.numpy as jnp
from jax import lax
from jax.experimental import pallas as pl
from jax.experimental.pallas import tpu as pltpu

E = 768    # BERT hidden size (nn.LSTM(768, 128))
H = 128    # LSTM hidden size per direction
OUT = 2    # fc output classes


# ----------------------------------------------------------------------------
# helpers
# ----------------------------------------------------------------------------
def _largest_divisor(n, candidates):
    for c in candidates:
        if c <= n and n % c == 0:
            return c
    return n


def _vmem_limit_bytes(block_bytes):
    # double-buffered blocks + headroom, kept below v7x's 64 MiB physical VMEM.
    return int(min(max(3 * block_bytes, 16 * 1024 * 1024), 48 * 1024 * 1024))


# ----------------------------------------------------------------------------
# kernel 1: hoisted input projection  gx = x @ [W_ih_f | W_ih_b] + (b_f | b_b)
# ----------------------------------------------------------------------------
def _input_proj_kernel(x_ref, w_ref, b_ref, o_ref):
    # x_ref: [TM, E] bf16, w_ref: [E, 8H] bf16, b_ref: [1, 8H] f32, o_ref: [TM, 8H] f32
    o_ref[...] = (jnp.dot(x_ref[...], w_ref[...],
                          preferred_element_type=jnp.float32)
                  + b_ref[...])


def input_projection(x2, w_cat, b_cat):
    M = x2.shape[0]                                   # S * B_padded (multiple of 8)
    TM = _largest_divisor(M, (512, 256, 128, 64, 32, 16, 8))
    # double-buffered input/output blocks + resident weight/bias
    blk_bytes = (2 * TM * E * 2 + 2 * E * 8 * H * 2 + 8 * H * 4
                 + 2 * TM * 8 * H * 4)
    return pl.pallas_call(
        _input_proj_kernel,
        out_shape=jax.ShapeDtypeStruct((M, 8 * H), jnp.float32),
        grid=(M // TM,),
        in_specs=[
            pl.BlockSpec((TM, E), lambda i: (i, 0)),
            pl.BlockSpec((E, 8 * H), lambda i: (0, 0)),
            pl.BlockSpec((1, 8 * H), lambda i: (0, 0)),
        ],
        out_specs=pl.BlockSpec((TM, 8 * H), lambda i: (i, 0)),
        compiler_params=pltpu.CompilerParams(
            dimension_semantics=("parallel",),
            vmem_limit_bytes=_vmem_limit_bytes(blk_bytes)),
    )(x2, w_cat, b_cat)


# ----------------------------------------------------------------------------
# kernel 2: bidirectional LSTM recurrence over precomputed gate pre-activations
# ----------------------------------------------------------------------------
def _bilstm_kernel(gxf_ref,          # [Ts, TB, 4H] fwd gate preacts (chunk i)
                   gxb_ref,          # [Ts, TB, 4H] bwd gate preacts (chunk NC-1-i)
                   wh_ref,           # [2H, 8H] block-diagonal recurrent weights (f32)
                   out_ref,          # [TB, 2H]  = concat(h_fwd_final, h_bwd_final)
                   hf_s, cf_s, hb_s, cb_s):   # VMEM scratch [TB, H] each
    nc = pl.num_programs(1)
    ci = pl.program_id(1)
    Ts = gxf_ref.shape[0]

    @pl.when(ci == 0)
    def _():
        hf_s[...] = jnp.zeros_like(hf_s)
        cf_s[...] = jnp.zeros_like(cf_s)
        hb_s[...] = jnp.zeros_like(hb_s)
        cb_s[...] = jnp.zeros_like(cb_s)

    wh = wh_ref[...]

    def step(t, carry):
        hf, cf, hb, cb = carry
        # single fused 256-deep recurrent contraction (block-diagonal weights)
        gh = jnp.dot(jnp.concatenate([hf, hb], axis=1), wh,
                     preferred_element_type=jnp.float32)          # [TB, 8H]
        gf = gxf_ref[t] + gh[:, :4 * H]                           # fwd gates i|f|g|o
        gb = gxb_ref[Ts - 1 - t] + gh[:, 4 * H:]                  # bwd gates i|f|g|o

        i_f = jax.nn.sigmoid(gf[:, 0:H])
        f_f = jax.nn.sigmoid(gf[:, H:2 * H])
        g_f = jnp.tanh(gf[:, 2 * H:3 * H])
        o_f = jax.nn.sigmoid(gf[:, 3 * H:4 * H])
        cf = f_f * cf + i_f * g_f
        hf = o_f * jnp.tanh(cf)

        i_b = jax.nn.sigmoid(gb[:, 0:H])
        f_b = jax.nn.sigmoid(gb[:, H:2 * H])
        g_b = jnp.tanh(gb[:, 2 * H:3 * H])
        o_b = jax.nn.sigmoid(gb[:, 3 * H:4 * H])
        cb = f_b * cb + i_b * g_b
        hb = o_b * jnp.tanh(cb)
        return hf, cf, hb, cb

    carry0 = (hf_s[...], cf_s[...], hb_s[...], cb_s[...])
    hf, cf, hb, cb = lax.fori_loop(0, Ts, step, carry0, unroll=True)

    hf_s[...] = hf
    cf_s[...] = cf
    hb_s[...] = hb
    cb_s[...] = cb

    @pl.when(ci == nc - 1)
    def _():
        out_ref[...] = jnp.concatenate([hf, hb], axis=1)


def bilstm_recurrence(gx, wh_blk):
    S, Bp, _ = gx.shape
    Ts = _largest_divisor(S, (8, 4, 2, 1))
    NC = S // Ts
    TB = _largest_divisor(Bp, (256, 128, 64, 32, 16, 8))
    NB = Bp // TB
    blk_bytes = (2 * 2 * Ts * TB * 4 * H * 4      # double-buffered fwd + bwd chunks
                 + 2 * H * 8 * H * 4              # resident recurrent weights
                 + TB * 2 * H * 4                 # output block
                 + 4 * TB * H * 4)                # scratch
    return pl.pallas_call(
        _bilstm_kernel,
        out_shape=jax.ShapeDtypeStruct((Bp, 2 * H), jnp.float32),
        grid=(NB, NC),
        in_specs=[
            pl.BlockSpec((Ts, TB, 4 * H), lambda b, i: (i, b, 0)),                    # fwd chunks
            pl.BlockSpec((Ts, TB, 4 * H), lambda b, i, nc=NC: (nc - 1 - i, b, 1)),    # bwd chunks (reversed)
            pl.BlockSpec((2 * H, 8 * H), lambda b, i: (0, 0)),
        ],
        out_specs=pl.BlockSpec((TB, 2 * H), lambda b, i: (b, 0)),
        scratch_shapes=[
            pltpu.VMEM((TB, H), jnp.float32),
            pltpu.VMEM((TB, H), jnp.float32),
            pltpu.VMEM((TB, H), jnp.float32),
            pltpu.VMEM((TB, H), jnp.float32),
        ],
        compiler_params=pltpu.CompilerParams(
            dimension_semantics=("parallel", "arbitrary"),
            vmem_limit_bytes=_vmem_limit_bytes(blk_bytes)),
    )(gx, gx, wh_blk)


# ----------------------------------------------------------------------------
# parameters (random stand-ins; PyTorch i|f|g|o gate order, weights pre-transposed)
# ----------------------------------------------------------------------------
def make_params(vocab_size=100, seed=0):
    key = jax.random.PRNGKey(seed)
    ks = jax.random.split(key, 9)
    s = 0.02
    return {
        "emb_table": jax.random.normal(ks[0], (vocab_size, E), jnp.float32) * s,
        "wih_f": jax.random.normal(ks[1], (E, 4 * H), jnp.float32) * s,
        "whh_f": jax.random.normal(ks[2], (H, 4 * H), jnp.float32) * s,
        "b_f":   jax.random.normal(ks[3], (1, 4 * H), jnp.float32) * s,   # b_ih + b_hh
        "wih_b": jax.random.normal(ks[4], (E, 4 * H), jnp.float32) * s,
        "whh_b": jax.random.normal(ks[5], (H, 4 * H), jnp.float32) * s,
        "b_b":   jax.random.normal(ks[6], (1, 4 * H), jnp.float32) * s,
        "wfc":   jax.random.normal(ks[7], (2 * H, OUT), jnp.float32) * s,
        "bfc":   jax.random.normal(ks[8], (1, OUT), jnp.float32) * s,
    }


# ----------------------------------------------------------------------------
# forward
# ----------------------------------------------------------------------------
def sentiment_forward(input_ids, attention_mask, params):
    B, S = input_ids.shape

    # --- simplified "BERT" (frozen embedding lookup stand-in), plain-JAX glue ---
    emb = params["emb_table"][input_ids]
    emb = emb * attention_mask[..., None].astype(jnp.float32)         # [B, S, E]

    # pad batch to a multiple of 8 sublanes for lane/MXU geometry
    Bp = max(8, -(-B // 8) * 8)
    if Bp != B:
        emb = jnp.pad(emb, ((0, Bp - B), (0, 0), (0, 0)))

    x = jnp.transpose(emb, (1, 0, 2)).astype(jnp.bfloat16)            # [S, Bp, E] time-major

    # 1) hoisted input projection: one big matmul over all S*Bp rows
    w_cat = jnp.concatenate([params["wih_f"], params["wih_b"]],
                            axis=1).astype(jnp.bfloat16)              # [E, 8H]
    b_cat = jnp.concatenate([params["b_f"], params["b_b"]], axis=1)   # [1, 8H] f32
    gx = input_projection(x.reshape(S * Bp, E), w_cat, b_cat)         # [S*Bp, 8H] f32
    gx = gx.reshape(S, Bp, 8 * H)

    # 2) recurrence (block-diagonal fused recurrent weights, built once)
    wh_blk = jnp.zeros((2 * H, 8 * H), jnp.float32)
    wh_blk = wh_blk.at[:H, :4 * H].set(params["whh_f"])
    wh_blk = wh_blk.at[H:, 4 * H:].set(params["whh_b"])
    hcat = bilstm_recurrence(gx, wh_blk)                              # [Bp, 2H]

    # 3) final Linear(256 -> 2) in XLA (lane-sparse width-2 output kept out of kernel)
    out = jnp.dot(hcat, params["wfc"]) + params["bfc"]                # [Bp, 2]
    return out[:B]


# ----------------------------------------------------------------------------
# pure-JAX reference (same bf16 input projection, f32 state math)
# ----------------------------------------------------------------------------
def reference_forward(input_ids, attention_mask, params):
    B, S = input_ids.shape
    emb = params["emb_table"][input_ids]
    emb = (emb * attention_mask[..., None].astype(jnp.float32)).astype(jnp.bfloat16)

    def cell(x_t, h, c, wih, whh, b):
        gates = (jnp.dot(x_t, wih.astype(jnp.bfloat16),
                         preferred_element_type=jnp.float32)
                 + jnp.dot(h, whh, preferred_element_type=jnp.float32,
                           precision=lax.Precision.HIGHEST)
                 + b)
        i = jax.nn.sigmoid(gates[:, 0:H])
        f = jax.nn.sigmoid(gates[:, H:2 * H])
        g = jnp.tanh(gates[:, 2 * H:3 * H])
        o = jax.nn.sigmoid(gates[:, 3 * H:4 * H])
        c = f * c + i * g
        return o * jnp.tanh(c), c

    hf = jnp.zeros((B, H), jnp.float32); cf = jnp.zeros((B, H), jnp.float32)
    hb = jnp.zeros((B, H), jnp.float32); cb = jnp.zeros((B, H), jnp.float32)
    for t in range(S):
        hf, cf = cell(emb[:, t], hf, cf, params["wih_f"], params["whh_f"], params["b_f"])
        hb, cb = cell(emb[:, S - 1 - t], hb, cb, params["wih_b"], params["whh_b"], params["b_b"])
    hcat = jnp.concatenate([hf, hb], axis=1)
    return jnp.dot(hcat, params["wfc"]) + params["bfc"]


if __name__ == "__main__":
    B, S, VOCAB = 2, 16, 100
    key = jax.random.PRNGKey(0)
    k_ids, _ = jax.random.split(key)

    input_ids = jax.random.randint(k_ids, (B, S), 0, VOCAB, dtype=jnp.int32)
    attention_mask = jnp.ones((B, S), dtype=jnp.int32).at[1, 12:].set(0)  # some padding

    params = make_params(vocab_size=VOCAB, seed=0)

    logits = sentiment_forward(input_ids, attention_mask, params)
    jax.block_until_ready(logits)
    assert logits.shape == (B, OUT) and logits.dtype == jnp.float32

    ref = reference_forward(input_ids, attention_mask, params)
    assert jnp.allclose(logits, ref, atol=1e-3, rtol=1e-2), (logits, ref)

    print("KERNEL_OK")
</pallas_src>

<mosaic_0001>
module attributes {stable_mosaic.version = 11 : i64} {
  func.func @_input_proj_kernel(%arg0: i32, %arg1: memref<128x768xbf16, #tpu.memory_space<vmem>>, %arg2: memref<768x1024xbf16, #tpu.memory_space<vmem>>, %arg3: memref<1x1024xf32, #tpu.memory_space<vmem>>, %arg4: memref<128x1024xf32, #tpu.memory_space<vmem>>) attributes {dimension_semantics = [#tpu.dimension_semantics<parallel>], iteration_bounds = array<i64: 1>, scalar_prefetch = 0 : i64, scratch_operands = 0 : i64, tpu.core_type = #tpu.core_type<tc>, window_params = [{transform_indices = @transform_0, window_bounds = array<i64: 128, 768>}, {pipeline_mode = #tpu.pipeline_mode<synchronous>, transform_indices = @transform_1, window_bounds = array<i64: 768, 1024>}, {pipeline_mode = #tpu.pipeline_mode<synchronous>, transform_indices = @transform_2, window_bounds = array<i64: 1, 1024>}, {transform_indices = @transform_3, window_bounds = array<i64: 128, 1024>}]} {
    %c0 = arith.constant 0 : index
    %c0_0 = arith.constant 0 : index
    %0 = vector.load %arg1[%c0, %c0_0] : memref<128x768xbf16, #tpu.memory_space<vmem>>, vector<128x768xbf16>
    %c0_1 = arith.constant 0 : index
    %c0_2 = arith.constant 0 : index
    %1 = vector.load %arg2[%c0_1, %c0_2] : memref<768x1024xbf16, #tpu.memory_space<vmem>>, vector<768x1024xbf16>
    %cst = arith.constant dense<0.000000e+00> : vector<128x1024xf32>
    %2 = tpu.matmul %0, %1, %cst {dimension_numbers = #tpu.dot_dimension_numbers<[1], [0], [0], [1], [0, 0, 1, 1], [], []>} : vector<128x768xbf16>, vector<768x1024xbf16>, vector<128x1024xf32> -> vector<128x1024xf32>
    %c0_3 = arith.constant 0 : index
    %c0_4 = arith.constant 0 : index
    %3 = vector.load %arg3[%c0_3, %c0_4] : memref<1x1024xf32, #tpu.memory_space<vmem>>, vector<1x1024xf32>
    %4 = vector.broadcast %3 : vector<1x1024xf32> to vector<128x1024xf32>
    %5 = arith.addf %2, %4 : vector<128x1024xf32>
    %c0_5 = arith.constant 0 : index
    %c0_6 = arith.constant 0 : index
    %6 = vector.load %arg4[%c0_5, %c0_6] : memref<128x1024xf32, #tpu.memory_space<vmem>>, vector<128x1024xf32>
    tpu.vector_store %arg4[%c0_5, %c0_6], %5 {strides = array<i32>} : memref<128x1024xf32, #tpu.memory_space<vmem>>, vector<128x1024xf32>,
    return
  }
  func.func @transform_0(%arg0: i32) -> (i32, i32) {
    %c0_i32 = arith.constant 0 : i32
    %c0_i32_0 = arith.constant 0 : i32
    return %arg0, %c0_i32 : i32, i32
  }
  func.func @transform_1(%arg0: i32) -> (i32, i32) {
    %c0_i32 = arith.constant 0 : i32
    %c0_i32_0 = arith.constant 0 : i32
    %c0_i32_1 = arith.constant 0 : i32
    return %c0_i32, %c0_i32_0 : i32, i32
  }
  func.func @transform_2(%arg0: i32) -> (i32, i32) {
    %c0_i32 = arith.constant 0 : i32
    %c0_i32_0 = arith.constant 0 : i32
    %c0_i32_1 = arith.constant 0 : i32
    return %c0_i32, %c0_i32_0 : i32, i32
  }
  func.func @transform_3(%arg0: i32) -> (i32, i32) {
    %c0_i32 = arith.constant 0 : i32
    %c0_i32_0 = arith.constant 0 : i32
    return %arg0, %c0_i32 : i32, i32
  }
}

</mosaic_0001>

<bundles_post_ra>
// kernel: tpu_custom_call.1
= control target key start
LH: loop header
LB: loop body
LE: loop exit
PB: predicated region body
PF: predicated region fallthrough
CT: control target
= control target key end

     0   :  { %8 = vsyncpa [#allocation3], 0  ;;  %s5472_s0 = inlined_call_operand.hbm [shape: bf16[128,768], index: 0, kind: input, shape index: {}]   ;;  %s5473_s1 = inlined_call_operand.hbm [shape: bf16[768,1024], index: 1, kind: input, shape index: {}]   ;;  %s5474_s2 = inlined_call_operand.hbm [shape: f32[1,1024], index: 2, kind: input, shape index: {}]   ;;  %s5475_s3 = inlined_call_operand.hbm [shape: f32[128,1024], index: 3, kind: output, shape index: {}]  }
   0x1   :  { %9 = vsyncpa [#allocation6], 0 }
   0x2   :  { %10 = vsyncpa [#allocation4], 0  ;;  %s5230_s12 = smov [#allocation5]   ;;  %s5136_s16 = scalar_lea.hbm %s5473_s1, 49152 }
   0x3   :  { %s28_s13 = sshll.u32 %s5230_s12, 4  ;;  %p5137_p0 = scmp.ne.s32.totalorder %s5473_s1, %s5136_s16  ;;  %s29_s13 = int_to_ptr.vmem [resolvable:$true] %s28_s13 }
   0x4   :  { %p5140_p1 = scmp.lt.u32.totalorder %s5136_s16, %s5473_s1 }
   0x6   :  { %p5142_p2 = pnand %p5140_p1, %p5137_p0 }
   0x8   :  { %5145 = shalt.err (!%p5142_p2)
}
   0x9   :  { %s5146_s21 = scalar_lea.vmem %s29_s13, 49152  ;;  %p5151_p4 = scmp.lt.s32.totalorder %s29_s13, %s29_s13 }
   0xa   :  { %p5147_p3 = scmp.ne.s32.totalorder %s29_s13, %s5146_s21  ;;  %p5152_p5 = scmp.lt.s32.totalorder %s5146_s21, %s5146_s21 }
   0xc   :  { %p5153_p6 = por %p5152_p5, %p5151_p4 }
   0xe   :  { %p5154_p7 = pnand %p5153_p6, %p5147_p3 }
  0x10   :  { %5157 = shalt.err (!%p5154_p7)
}
  0x11   :  { %s5231_s22 = smov 512   ;;  %s5232_s23 = smov 32  }
  0x12   :  { %34 = dma.hbm_to_vmem [thread:$0]  %s5473_s1, 49152, %s29_s13, [#allocation6], %s5231_s22, %s5231_s22, %s5232_s23  }
  0x13   :  { %s5233_s26 = smov [#allocation2]   ;;  %s5158_s30 = scalar_lea.hbm %s5472_s0, 6144 }
  0x14   :  { %s16_s27 = sshll.u32 %s5233_s26, 4  ;;  %p5159_p8 = scmp.ne.s32.totalorder %s5472_s0, %s5158_s30  ;;  %s17_s27 = int_to_ptr.vmem [resolvable:$true] %s16_s27 }
  0x15   :  { %p5162_p9 = scmp.lt.u32.totalorder %s5158_s30, %s5472_s0 }
  0x17   :  { %p5164_p10 = pnand %p5162_p9, %p5159_p8 }
  0x19   :  { %5167 = shalt.err (!%p5164_p10)
}
  0x1a   :  { %s5168_s8 = scalar_lea.vmem %s17_s27, 6144  ;;  %p5173_p12 = scmp.lt.s32.totalorder %s17_s27, %s17_s27 }
  0x1b   :  { %p5169_p11 = scmp.ne.s32.totalorder %s17_s27, %s5168_s8  ;;  %p5174_p13 = scmp.lt.s32.totalorder %s5168_s8, %s5168_s8 }
  0x1d   :  { %p5175_p0 = por %p5174_p13, %p5173_p12 }
  0x1f   :  { %p5176_p1 = pnand %p5175_p0, %p5169_p11 }
  0x21   :  { %5179 = shalt.err (!%p5176_p1)
}
  0x22   :  { %s5234_s1 = smov 384   ;;  %s5235_s9 = smov 24  }
  0x23   :  { %22 = dma.hbm_to_vmem [thread:$0]  %s5472_s0, 6144, %s17_s27, [#allocation3], %s5234_s1, %s5234_s1, %s5235_s9  }
  0x24   :  { %s5236_s12 = smov [#allocation7]   ;;  %s5180_s16 = scalar_lea.hbm %s5474_s2, 128 }
  0x25   :  { %s41_s13 = sshll.u32 %s5236_s12, 4  ;;  %p5181_p2 = scmp.ne.s32.totalorder %s5474_s2, %s5180_s16  ;;  %s42_s13 = int_to_ptr.vmem [resolvable:$true] %s41_s13 }
  0x26   :  { %p5184_p3 = scmp.lt.u32.totalorder %s5180_s16, %s5474_s2 }
  0x28   :  { %p5186_p4 = pnand %p5184_p3, %p5181_p2 }
  0x2a   :  { %5189 = shalt.err (!%p5186_p4)
}
  0x2b   :  { %s5190_s21 = scalar_lea.vmem %s42_s13, 128  ;;  %p5195_p6 = scmp.lt.s32.totalorder %s42_s13, %s42_s13 }
  0x2c   :  { %p5191_p5 = scmp.ne.s32.totalorder %s42_s13, %s5190_s21  ;;  %p5196_p7 = scmp.lt.s32.totalorder %s5190_s21, %s5190_s21 }
  0x2e   :  { %p5197_p8 = por %p5196_p7, %p5195_p6 }
  0x30   :  { %p5198_p9 = pnand %p5197_p8, %p5191_p5 }
  0x32   :  { %5201 = shalt.err (!%p5198_p9)
}
  0x33   :  { %44 = dma.hbm_to_vmem [thread:$0]  %s5474_s2, 128, %s42_s13, [#allocation6]  }
  0x34   :  { %5224 = dma.done.wait [#allocation3], 6144  }
  0x35   :  { %5225 = vsyncadd [#allocation3], 4294961152 }
  0x36   :  { %5226 = dma.done.wait [#allocation6], 49280  }
  0x37   :  { %5227 = vsyncadd [#allocation6], 4294918016  ;;  %v102_v0 = vld [vmem:[#allocation5] sm:$0xff]  ;;  %v103_v2 = vld [vmem:[#allocation5 + $0x8] sm:$0xff]  ;;  %s5237_s2 = smov [#allocation8]  }
  0x38   :  { %v106_v1 = vld [vmem:[#allocation5 + $0x20] sm:$0xff]  ;;  %v107_v4 = vld [vmem:[#allocation5 + $0x28] sm:$0xff]  ;;  %s4177_s23 = sshll.u32 %s5237_s2, 4  ;;  %s4178_s23 = int_to_ptr.vmem [resolvable:$true] %s4177_s23 }
  0x39   :  { %v4239_v3 = vcombine.high %v102_v0, %v106_v1  ;;  %v4238_v5 = vcombine.low %v102_v0, %v106_v1  ;;  %v110_v6 = vld [vmem:[#allocation5 + $0x40] sm:$0xff]  ;;  %v4241_v8 = vcombine.high %v103_v2, %v107_v4  ;;  %v4240_v9 = vcombine.low %v103_v2, %v107_v4  ;;  %v111_v11 = vld [vmem:[#allocation5 + $0x48] sm:$0xff]  ;;  %s5202_s24 = scalar_lea.vmem %s4178_s23, 16384  ;;  %p5207_p11 = scmp.lt.s32.totalorder %s4178_s23, %s4178_s23 }
  0x3a   :  { %v114_v7 = vld [vmem:[#allocation5 + $0x60] sm:$0xff]  ;;  %v115_v12 = vld [vmem:[#allocation5 + $0x68] sm:$0xff]  ;;  %p5203_p10 = scmp.ne.s32.totalorder %s4178_s23, %s5202_s24  ;;  %p5208_p12 = scmp.lt.s32.totalorder %s5202_s24, %s5202_s24 }
  0x3b   :  { %v4247_v10 = vcombine.high %v110_v6, %v114_v7  ;;  %v118_v13 = vld [vmem:[#allocation5 + $0x80] sm:$0xff]  ;;  %2688 = vmatprep.subr.bf16.mxu0 %v4239_v3  ;;  %v4249_v14 = vcombine.high %v111_v11, %v115_v12  ;;  %v119_v16 = vld [vmem:[#allocation5 + $0x88] sm:$0xff]  ;;  %3027 = vmatprep.subr.bf16.mxu1 %v4241_v8  ;;  %v4246_v18 = vcombine.low %v110_v6, %v114_v7 }
  0x3c   :  { %v122_v15 = vld [vmem:[#allocation5 + $0xa0] sm:$0xff]  ;;  %v123_v17 = vld [vmem:[#allocation5 + $0xa8] sm:$0xff]  ;;  %2689 = vmatpush1.bf16.msra.mxu0 %v4238_v5  ;;  %3028 = vmatpush1.bf16.msra.mxu1 %v4240_v9  ;;  %v4248_v19 = vcombine.low %v111_v11, %v115_v12  ;;  %p5209_p13 = por %p5208_p12, %p5207_p11 }
  0x3d   :  { %2690 = vmatprep.subr.bf16.mxu0 %v4247_v10  ;;  %v4255_v20 = vcombine.high %v118_v13, %v122_v15  ;;  %3029 = vmatprep.subr.bf16.mxu1 %v4249_v14  ;;  %v4257_v21 = vcombine.high %v119_v16, %v123_v17  ;;  %v126_v22 = vld [vmem:[#allocation5 + $0xc0] sm:$0xff]  ;;  %v127_v24 = vld [vmem:[#allocation5 + $0xc8] sm:$0xff]  ;;  %v4254_v26 = vcombine.low %v118_v13, %v122_v15 }
  0x3e   :  { %v130_v23 = vld [vmem:[#allocation5 + $0xe0] sm:$0xff]  ;;  %v131_v25 = vld [vmem:[#allocation5 + $0xe8] sm:$0xff]  ;;  %v4256_v27 = vcombine.low %v119_v16, %v123_v17  ;;  %p5210_p0 = pnand %p5209_p13, %p5203_p10 }
  0x3f   :  { %v4263_v28 = vcombine.high %v126_v22, %v130_v23  ;;  %v4265_v29 = vcombine.high %v127_v24, %v131_v25  ;;  %v134_v30 = vld [vmem:[#allocation5 + $0x100] sm:$0xff]  ;;  %v135_v32 = vld [vmem:[#allocation5 + $0x108] sm:$0xff]  ;;  %v4262_v34 = vcombine.low %v126_v22, %v130_v23  ;;  %v4264_v35 = vcombine.low %v127_v24, %v131_v25 }
  0x40   :  { %2691 = vmatpush1.bf16.msra.mxu0 %v4246_v18  ;;  %3030 = vmatpush1.bf16.msra.mxu1 %v4248_v19  ;;  %v138_v31 = vld [vmem:[#allocation5 + $0x120] sm:$0xff]  ;;  %v139_v33 = vld [vmem:[#allocation5 + $0x128] sm:$0xff] }
  0x41   :  { %2692 = vmatprep.subr.bf16.mxu0 %v4255_v20  ;;  %3031 = vmatprep.subr.bf16.mxu1 %v4257_v21  ;;  %v4271_v36 = vcombine.high %v134_v30, %v138_v31  ;;  %v4273_v37 = vcombine.high %v135_v32, %v139_v33  ;;  %v142_v38 = vld [vmem:[#allocation5 + $0x140] sm:$0xff]  ;;  %v143_v40 = vld [vmem:[#allocation5 + $0x148] sm:$0xff]  ;;  %v4270_v42 = vcombine.low %v134_v30, %v138_v31 }
  0x42   :  { %v146_v39 = vld [vmem:[#allocation5 + $0x160] sm:$0xff]  ;;  %v147_v41 = vld [vmem:[#allocation5 + $0x168] sm:$0xff]  ;;  %v4272_v43 = vcombine.low %v135_v32, %v139_v33 }
  0x43   :  { %v4279_v44 = vcombine.high %v142_v38, %v146_v39  ;;  %v4281_v45 = vcombine.high %v143_v40, %v147_v41  ;;  %v150_v46 = vld [vmem:[#allocation5 + $0x180] sm:$0xff]  ;;  %v151_v48 = vld [vmem:[#allocation5 + $0x188] sm:$0xff]  ;;  %v4278_v50 = vcombine.low %v142_v38, %v146_v39  ;;  %v4280_v51 = vcombine.low %v143_v40, %v147_v41 }
  0x44   :  { %2693 = vmatpush1.bf16.msra.mxu0 %v4254_v26  ;;  %3032 = vmatpush1.bf16.msra.mxu1 %v4256_v27  ;;  %v154_v47 = vld [vmem:[#allocation5 + $0x1a0] sm:$0xff]  ;;  %v155_v49 = vld [vmem:[#allocation5 + $0x1a8] sm:$0xff] }
  0x45   :  { %2694 = vmatprep.subr.bf16.mxu0 %v4263_v28  ;;  %3033 = vmatprep.subr.bf16.mxu1 %v4265_v29  ;;  %v4287_v52 = vcombine.high %v150_v46, %v154_v47  ;;  %v4289_v53 = vcombine.high %v151_v48, %v155_v49  ;;  %v158_v54 = vld [vmem:[#allocation5 + $0x1c0] sm:$0xff]  ;;  %v159_v57 = vld [vmem:[#allocation5 + $0x1c8] sm:$0xff]  ;;  %v4286_v59 = vcombine.low %v150_v46, %v154_v47 }
  0x46   :  { %v162_v55 = vld [vmem:[#allocation5 + $0x1e0] sm:$0xff]  ;;  %v163_v58 = vld [vmem:[#allocation5 + $0x1e8] sm:$0xff]  ;;  %v4288_v60 = vcombine.low %v151_v48, %v155_v49 }
  0x47   :  { %v5016_v56 = vld [vmem:[#allocation2 + $0x4] ss:$24 sps:$4 sm:$0xff]   ;;  %v4295_v61 = vcombine.high %v158_v54, %v162_v55  ;;  %v4297_v62 = vcombine.high %v159_v57, %v163_v58  ;;  %v167_v1 = vld [vmem:[#allocation5 + $0x208] sm:$0xff]  ;;  %v4294_v3 = vcombine.low %v158_v54, %v162_v55  ;;  %v4296_v4 = vcombine.low %v159_v57, %v163_v58 }
  0x48   :  { %2695 = vmatpush1.bf16.msra.mxu0 %v4262_v34  ;;  %3034 = vmatpush1.bf16.msra.mxu1 %v4264_v35  ;;  %v166_v63 = vld [vmem:[#allocation5 + $0x200] sm:$0xff]  ;;  %v171_v2 = vld [vmem:[#allocation5 + $0x228] sm:$0xff] }
  0x49   :  { %2696 = vmatprep.subr.bf16.mxu0 %v4271_v36  ;;  %3035 = vmatprep.subr.bf16.mxu1 %v4273_v37  ;;  %v170_v0 = vld [vmem:[#allocation5 + $0x220] sm:$0xff]  ;;  %v4305_v6 = vcombine.high %v167_v1, %v171_v2  ;;  %v175_v9 = vld [vmem:[#allocation5 + $0x248] sm:$0xff]  ;;  %v4304_v12 = vcombine.low %v167_v1, %v171_v2 }
  0x4a   :  { %2720 = vmatprep.mubr.bf16.mxu0 %v5016_v56  ;;  %3059 = vmatprep.mubr.bf16.mxu1 %v5016_v56  ;;  %v4303_v5 = vcombine.high %v166_v63, %v170_v0  ;;  %v174_v7 = vld [vmem:[#allocation5 + $0x240] sm:$0xff]  ;;  %v179_v10 = vld [vmem:[#allocation5 + $0x268] sm:$0xff]  ;;  %v4302_v11 = vcombine.low %v166_v63, %v170_v0 }
  0x4b   :  { %v178_v8 = vld [vmem:[#allocation5 + $0x260] sm:$0xff]  ;;  %v4313_v14 = vcombine.high %v175_v9, %v179_v10  ;;  %v183_v17 = vld [vmem:[#allocation5 + $0x288] sm:$0xff]  ;;  %v4312_v20 = vcombine.low %v175_v9, %v179_v10 }
  0x4c   :  { %2697 = vmatpush1.bf16.msra.mxu0 %v4270_v42  ;;  %3036 = vmatpush1.bf16.msra.mxu1 %v4272_v43  ;;  %v4311_v13 = vcombine.high %v174_v7, %v178_v8  ;;  %v182_v15 = vld [vmem:[#allocation5 + $0x280] sm:$0xff]  ;;  %v187_v18 = vld [vmem:[#allocation5 + $0x2a8] sm:$0xff]  ;;  %v4310_v19 = vcombine.low %v174_v7, %v178_v8 }
  0x4d   :  { %2698 = vmatprep.subr.bf16.mxu0 %v4279_v44  ;;  %3037 = vmatprep.subr.bf16.mxu1 %v4281_v45  ;;  %v186_v16 = vld [vmem:[#allocation5 + $0x2a0] sm:$0xff]  ;;  %v4321_v22 = vcombine.high %v183_v17, %v187_v18  ;;  %v191_v25 = vld [vmem:[#allocation5 + $0x2c8] sm:$0xff]  ;;  %v4320_v28 = vcombine.low %v183_v17, %v187_v18 }
  0x4e   :  { %v4319_v21 = vcombine.high %v182_v15, %v186_v16  ;;  %v190_v23 = vld [vmem:[#allocation5 + $0x2c0] sm:$0xff]  ;;  %v195_v26 = vld [vmem:[#allocation5 + $0x2e8] sm:$0xff]  ;;  %v4318_v27 = vcombine.low %v182_v15, %v186_v16 }
  0x4f   :  { %v194_v24 = vld [vmem:[#allocation5 + $0x2e0] sm:$0xff]  ;;  %v4329_v30 = vcombine.high %v191_v25, %v195_v26  ;;  %v199_v33 = vld [vmem:[#allocation5 + $0x308] sm:$0xff]  ;;  %v4328_v36 = vcombine.low %v191_v25, %v195_v26 }
  0x50   :  { %2699 = vmatpush1.bf16.msra.mxu0 %v4278_v50  ;;  %3038 = vmatpush1.bf16.msra.mxu1 %v4280_v51  ;;  %v4327_v29 = vcombine.high %v190_v23, %v194_v24  ;;  %v198_v31 = vld [vmem:[#allocation5 + $0x300] sm:$0xff]  ;;  %v203_v34 = vld [vmem:[#allocation5 + $0x328] sm:$0xff]  ;;  %v4326_v35 = vcombine.low %v190_v23, %v194_v24 }
  0x51   :  { %2700 = vmatprep.subr.bf16.mxu0 %v4287_v52  ;;  %3039 = vmatprep.subr.bf16.mxu1 %v4289_v53  ;;  %v202_v32 = vld [vmem:[#allocation5 + $0x320] sm:$0xff]  ;;  %v4337_v38 = vcombine.high %v199_v33, %v203_v34  ;;  %v207_v41 = vld [vmem:[#allocation5 + $0x348] sm:$0xff]  ;;  %v4336_v44 = vcombine.low %v199_v33, %v203_v34 }
  0x52   :  { %v4335_v37 = vcombine.high %v198_v31, %v202_v32  ;;  %v206_v39 = vld [vmem:[#allocation5 + $0x340] sm:$0xff]  ;;  %v211_v42 = vld [vmem:[#allocation5 + $0x368] sm:$0xff]  ;;  %v4334_v43 = vcombine.low %v198_v31, %v202_v32 }
  0x53   :  { %v210_v40 = vld [vmem:[#allocation5 + $0x360] sm:$0xff]  ;;  %v4345_v46 = vcombine.high %v207_v41, %v211_v42  ;;  %v215_v49 = vld [vmem:[#allocation5 + $0x388] sm:$0xff]  ;;  %v4344_v52 = vcombine.low %v207_v41, %v211_v42 }
  0x54   :  { %2701 = vmatpush1.bf16.msra.mxu0 %v4286_v59  ;;  %3040 = vmatpush1.bf16.msra.mxu1 %v4288_v60  ;;  %v4343_v45 = vcombine.high %v206_v39, %v210_v40  ;;  %v214_v47 = vld [vmem:[#allocation5 + $0x380] sm:$0xff]  ;;  %v219_v50 = vld [vmem:[#allocation5 + $0x3a8] sm:$0xff]  ;;  %v4342_v51 = vcombine.low %v206_v39, %v210_v40 }
  0x55   :  { %2702 = vmatprep.subr.bf16.mxu0 %v4295_v61  ;;  %3041 = vmatprep.subr.bf16.mxu1 %v4297_v62  ;;  %v218_v48 = vld [vmem:[#allocation5 + $0x3a0] sm:$0xff]  ;;  %v4353_v54 = vcombine.high %v215_v49, %v219_v50  ;;  %v223_v57 = vld [vmem:[#allocation5 + $0x3c8] sm:$0xff]  ;;  %v4352_v60 = vcombine.low %v215_v49, %v219_v50 }
  0x56   :  { %v4351_v53 = vcombine.high %v214_v47, %v218_v48  ;;  %v222_v55 = vld [vmem:[#allocation5 + $0x3c0] sm:$0xff]  ;;  %v227_v58 = vld [vmem:[#allocation5 + $0x3e8] sm:$0xff]  ;;  %v4350_v59 = vcombine.low %v214_v47, %v218_v48 }
  0x57   :  { %v226_v56 = vld [vmem:[#allocation5 + $0x3e0] sm:$0xff]  ;;  %v4361_v62 = vcombine.high %v223_v57, %v227_v58  ;;  %v231_v1 = vld [vmem:[#allocation5 + $0x408] sm:$0xff] }
  0x58   :  { %2703 = vmatpush1.bf16.msra.mxu0 %v4294_v3  ;;  %3042 = vmatpush1.bf16.msra.mxu1 %v4296_v4  ;;  %v4359_v61 = vcombine.high %v222_v55, %v226_v56  ;;  %v230_v63 = vld [vmem:[#allocation5 + $0x400] sm:$0xff]  ;;  %v235_v2 = vld [vmem:[#allocation5 + $0x428] sm:$0xff]  ;;  %v4358_v3 = vcombine.low %v222_v55, %v226_v56  ;;  %v4360_v4 = vcombine.low %v223_v57, %v227_v58 }
  0x59   :  { %2704 = vmatprep.subr.bf16.mxu0 %v4303_v5  ;;  %3043 = vmatprep.subr.bf16.mxu1 %v4305_v6  ;;  %v234_v0 = vld [vmem:[#allocation5 + $0x420] sm:$0xff]  ;;  %v4369_v6 = vcombine.high %v231_v1, %v235_v2  ;;  %v239_v10 = vld [vmem:[#allocation5 + $0x448] sm:$0xff] }
  0x5a   :  { %v4367_v5 = vcombine.high %v230_v63, %v234_v0  ;;  %v238_v7 = vld [vmem:[#allocation5 + $0x440] sm:$0xff]  ;;  %v5019_v16 = vld [vmem:[#allocation2 + $0x34] ss:$24 sps:$4 sm:$0xff]  }
  0x5b   :  { %v242_v8 = vld [vmem:[#allocation5 + $0x460] sm:$0xff]  ;;  %v275_v47 = vld [vmem:[#allocation5 + $0x568] sm:$0xff] }
  0x5c   :  { %2705 = vmatpush1.bf16.msra.mxu0 %v4302_v11  ;;  %3044 = vmatpush1.bf16.msra.mxu1 %v4304_v12  ;;  %v5018_v9 = vld [vmem:[#allocation2] ss:$24 sps:$4 sm:$0xff]   ;;  %v243_v11 = vld [vmem:[#allocation5 + $0x468] sm:$0xff]  ;;  %v4366_v12 = vcombine.low %v230_v63, %v234_v0  ;;  %v5022_v34 = vld [vmem:[#allocation2 + $0x64] ss:$24 sps:$4 sm:$0xff]  }
  0x5d   :  { %2706 = vmatprep.subr.bf16.mxu0 %v4311_v13  ;;  %3045 = vmatprep.subr.bf16.mxu1 %v4313_v14  ;;  %v4368_v13 = vcombine.low %v231_v1, %v235_v2  ;;  %v4375_v14 = vcombine.high %v238_v7, %v242_v8  ;;  %v4377_v15 = vcombine.high %v239_v10, %v243_v11  ;;  %v246_v17 = vld [vmem:[#allocation5 + $0x480] sm:$0xff]  ;;  %v279_v55 = vld [vmem:[#allocation5 + $0x588] sm:$0xff] }
  0x5e   :  { %v250_v18 = vld [vmem:[#allocation5 + $0x4a0] sm:$0xff]  ;;  %v283_v56 = vld [vmem:[#allocation5 + $0x5a8] sm:$0xff] }
  0x5f   :  { %v4383_v23 = vcombine.high %v246_v17, %v250_v18  ;;  %v254_v25 = vld [vmem:[#allocation5 + $0x4c0] sm:$0xff]  ;;  %v5027_v63 = vld [vmem:[#allocation2 + $0x90] ss:$24 sps:$4 sm:$0xff]  }
  0x60   :  { %2707 = vmatpush1.bf16.msra.mxu0 %v4310_v19  ;;  %3046 = vmatpush1.bf16.msra.mxu1 %v4312_v20  ;;  %v247_v19 = vld [vmem:[#allocation5 + $0x488] sm:$0xff]  ;;  %v258_v26 = vld [vmem:[#allocation5 + $0x4e0] sm:$0xff] }
  0x61   :  { %2708 = vmatprep.subr.bf16.mxu0 %v4319_v21  ;;  %3047 = vmatprep.subr.bf16.mxu1 %v4321_v22  ;;  %v251_v20 = vld [vmem:[#allocation5 + $0x4a8] sm:$0xff]  ;;  %v4374_v21 = vcombine.low %v238_v7, %v242_v8  ;;  %v4376_v22 = vcombine.low %v239_v10, %v243_v11  ;;  %v4391_v32 = vcombine.high %v254_v25, %v258_v26  ;;  %v294_v7 = vld [vmem:[#allocation5 + $0x600] sm:$0xff] }
  0x62   :  { %v4385_v24 = vcombine.high %v247_v19, %v251_v20  ;;  %v4384_v31 = vcombine.low %v247_v19, %v251_v20  ;;  %v4390_v39 = vcombine.low %v254_v25, %v258_v26  ;;  %v287_v0 = vld [vmem:[#allocation5 + $0x5c8] sm:$0xff]  ;;  %v298_v8 = vld [vmem:[#allocation5 + $0x620] sm:$0xff] }
  0x63   :  { %v291_v1 = vld [vmem:[#allocation5 + $0x5e8] sm:$0xff]  ;;  %v4430_v20 = vcombine.low %v294_v7, %v298_v8  ;;  %v310_v25 = vld [vmem:[#allocation5 + $0x680] sm:$0xff] }
  0x64   :  { %2709 = vmatpush1.bf16.msra.mxu0 %v4318_v27  ;;  %3048 = vmatpush1.bf16.msra.mxu1 %v4320_v28  ;;  %v5021_v27 = vld [vmem:[#allocation2 + $0x30] ss:$24 sps:$4 sm:$0xff]   ;;  %v314_v26 = vld [vmem:[#allocation5 + $0x6a0] sm:$0xff] }
  0x65   :  { %2710 = vmatprep.subr.bf16.mxu0 %v4327_v29  ;;  %3049 = vmatprep.subr.bf16.mxu1 %v4329_v30  ;;  %v255_v28 = vld [vmem:[#allocation5 + $0x4c8] sm:$0xff]  ;;  %v4382_v30 = vcombine.low %v246_v17, %v250_v18  ;;  %v5030_v17 = vld [vmem:[#allocation2 + $0xc0] ss:$24 sps:$4 sm:$0xff]  }
  0x66   :  { %v259_v29 = vld [vmem:[#allocation5 + $0x4e8] sm:$0xff] }
  0x67   :  { %v4393_v33 = vcombine.high %v255_v28, %v259_v29  ;;  %v4392_v40 = vcombine.low %v255_v28, %v259_v29  ;;  %v299_v10 = vld [vmem:[#allocation5 + $0x628] sm:$0xff] }
  0x68   :  { %2711 = vmatpush1.bf16.msra.mxu0 %v4326_v35  ;;  %3050 = vmatpush1.bf16.msra.mxu1 %v4328_v36  ;;  %v262_v35 = vld [vmem:[#allocation5 + $0x500] sm:$0xff]  ;;  %v303_v18 = vld [vmem:[#allocation5 + $0x648] sm:$0xff] }
  0x69   :  { %2712 = vmatprep.subr.bf16.mxu0 %v4335_v37  ;;  %3051 = vmatprep.subr.bf16.mxu1 %v4337_v38  ;;  %v266_v36 = vld [vmem:[#allocation5 + $0x520] sm:$0xff]  ;;  %v263_v37 = vld [vmem:[#allocation5 + $0x508] sm:$0xff] }
  0x6a   :  { %v267_v38 = vld [vmem:[#allocation5 + $0x528] sm:$0xff]  ;;  %v4399_v41 = vcombine.high %v262_v35, %v266_v36  ;;  %v4398_v48 = vcombine.low %v262_v35, %v266_v36 }
  0x6b   :  { %v4401_v42 = vcombine.high %v263_v37, %v267_v38  ;;  %v4400_v49 = vcombine.low %v263_v37, %v267_v38  ;;  %v307_v19 = vld [vmem:[#allocation5 + $0x668] sm:$0xff]  ;;  %v4446_v38 = vcombine.low %v310_v25, %v314_v26 }
  0x6c   :  { %2713 = vmatpush1.bf16.msra.mxu0 %v4334_v43  ;;  %3052 = vmatpush1.bf16.msra.mxu1 %v4336_v44  ;;  %v270_v43 = vld [vmem:[#allocation5 + $0x540] sm:$0xff]  ;;  %v315_v28 = vld [vmem:[#allocation5 + $0x6a8] sm:$0xff] }
  0x6d   :  { %2714 = vmatprep.subr.bf16.mxu0 %v4343_v45  ;;  %3053 = vmatprep.subr.bf16.mxu1 %v4345_v46  ;;  %v274_v44 = vld [vmem:[#allocation5 + $0x560] sm:$0xff]  ;;  %v271_v46 = vld [vmem:[#allocation5 + $0x548] sm:$0xff] }
  0x6e   :  { %v5024_v45 = vld [vmem:[#allocation2 + $0x60] ss:$24 sps:$4 sm:$0xff]   ;;  %v4407_v50 = vcombine.high %v270_v43, %v274_v44  ;;  %v4406_v57 = vcombine.low %v270_v43, %v274_v44  ;;  %v4408_v58 = vcombine.low %v271_v46, %v275_v47  ;;  %v5033_v35 = vld [vmem:[#allocation2 + $0xf0] ss:$24 sps:$4 sm:$0xff]  }
  0x6f   :  { %v319_v36 = vld [vmem:[#allocation5 + $0x6c8] sm:$0xff]  ;;  %v326_v43 = vld [vmem:[#allocation5 + $0x700] sm:$0xff] }
  0x70   :  { %2715 = vmatpush1.bf16.msra.mxu0 %v4342_v51  ;;  %3054 = vmatpush1.bf16.msra.mxu1 %v4344_v52  ;;  %v4409_v51 = vcombine.high %v271_v46, %v275_v47  ;;  %v5025_v52 = vld [vmem:[#allocation2 + $0x94] ss:$24 sps:$4 sm:$0xff]   ;;  %v330_v44 = vld [vmem:[#allocation5 + $0x720] sm:$0xff] }
  0x71   :  { %2716 = vmatprep.subr.bf16.mxu0 %v4351_v53  ;;  %3055 = vmatprep.subr.bf16.mxu1 %v4353_v54  ;;  %v278_v53 = vld [vmem:[#allocation5 + $0x580] sm:$0xff]  ;;  %v323_v37 = vld [vmem:[#allocation5 + $0x6e8] sm:$0xff] }
  0x72   :  { %v282_v54 = vld [vmem:[#allocation5 + $0x5a0] sm:$0xff]  ;;  %v331_v46 = vld [vmem:[#allocation5 + $0x728] sm:$0xff] }
  0x73   :  { %v4414_v2 = vcombine.low %v278_v53, %v282_v54 }
  0x74   :  { %2717 = vmatpush1.bf16.msra.mxu0 %v4350_v59  ;;  %3056 = vmatpush1.bf16.msra.mxu1 %v4352_v60  ;;  %v4415_v59 = vcombine.high %v278_v53, %v282_v54  ;;  %v4417_v60 = vcombine.high %v279_v55, %v283_v56  ;;  %v5036_v53 = vld [vmem:[#allocation2 + $0x120] ss:$24 sps:$4 sm:$0xff]   ;;  %v335_v54 = vld [vmem:[#allocation5 + $0x748] sm:$0xff] }
  0x75   :  { %2718 = vmatprep.subr.bf16.mxu0 %v4359_v61  ;;  %3057 = vmatprep.subr.bf16.mxu1 %v4361_v62  ;;  %v286_v61 = vld [vmem:[#allocation5 + $0x5c0] sm:$0xff] }
  0x76   :  { %v290_v62 = vld [vmem:[#allocation5 + $0x5e0] sm:$0xff] }
  0x77   :  { %v4422_v11 = vcombine.low %v286_v61, %v290_v62 }
  0x78   :  { %2719 = vmatpush1.bf16.msra.mxu0 %v4358_v3  ;;  %3058 = vmatpush1.bf16.msra.mxu1 %v4360_v4  ;;  %v4416_v3 = vcombine.low %v279_v55, %v283_v56  ;;  %v4423_v4 = vcombine.high %v286_v61, %v290_v62  ;;  %v339_v55 = vld [vmem:[#allocation5 + $0x768] sm:$0xff]  ;;  %v4462_v56 = vcombine.low %v326_v43, %v330_v44  ;;  %v342_v61 = vld [vmem:[#allocation5 + $0x780] sm:$0xff] }
  0x79   :  { %2801 = vmatprep.subr.bf16.mxu0 %v4367_v5  ;;  %3140 = vmatprep.subr.bf16.mxu1 %v4369_v6  ;;  %v4425_v5 = vcombine.high %v287_v0, %v291_v1  ;;  %v5028_v6 = vld [vmem:[#allocation2 + $0xc4] ss:$24 sps:$4 sm:$0xff]  }
  0x7a   :  { %v346_v62 = vld [vmem:[#allocation5 + $0x7a0] sm:$0xff] }
  0x7b   :  { %2721 = vmatmul.mubr.bf16.vlgmr.msra.gmra.mrb[0].mxu0 %v5018_v9  ;;  %3060 = vmatmul.mubr.bf16.vlgmr.msra.gmra.mrb[0].mxu1 %v5018_v9  ;;  %v295_v9 = vld [vmem:[#allocation5 + $0x608] sm:$0xff] }
  0x7c   :  { %2802 = vmatpush1.bf16.msra.mxu0 %v4366_v12  ;;  %3141 = vmatpush1.bf16.msra.mxu1 %v4368_v13  ;;  %v4424_v12 = vcombine.low %v287_v0, %v291_v1  ;;  %v4431_v13 = vcombine.high %v294_v7, %v298_v8  ;;  %v347_v0 = vld [vmem:[#allocation5 + $0x7a8] sm:$0xff] }
  0x7d   :  { %2803 = vmatprep.subr.bf16.mxu0 %v4375_v14  ;;  %3142 = vmatprep.subr.bf16.mxu1 %v4377_v15  ;;  %v4433_v14 = vcombine.high %v295_v9, %v299_v10  ;;  %v302_v15 = vld [vmem:[#allocation5 + $0x640] sm:$0xff]  ;;  %v5039_v7 = vld [vmem:[#allocation2 + $0x150] ss:$24 sps:$4 sm:$0xff]  }
  0x7e   :  { %2730 = vmatprep.mubr.bf16.mxu0 %v5019_v16  ;;  %3069 = vmatprep.mubr.bf16.mxu1 %v5019_v16  ;;  %v306_v16 = vld [vmem:[#allocation5 + $0x660] sm:$0xff]  ;;  %v351_v8 = vld [vmem:[#allocation5 + $0x7c8] sm:$0xff] }
  0x7f   :  { %v4438_v29 = vcombine.low %v302_v15, %v306_v16 }
  0x80   :  { %2804 = vmatpush1.bf16.msra.mxu0 %v4374_v21  ;;  %3143 = vmatpush1.bf16.msra.mxu1 %v4376_v22  ;;  %v4432_v21 = vcombine.low %v295_v9, %v299_v10  ;;  %v4439_v22 = vcombine.high %v302_v15, %v306_v16  ;;  %v355_v9 = vld [vmem:[#allocation5 + $0x7e8] sm:$0xff]  ;;  %v4478_v10 = vcombine.low %v342_v61, %v346_v62  ;;  %v358_v15 = vld [vmem:[#allocation5 + $0x800] sm:$0xff] }
  0x81   :  { %2805 = vmatprep.subr.bf16.mxu0 %v4383_v23  ;;  %3144 = vmatprep.subr.bf16.mxu1 %v4385_v24  ;;  %v4441_v23 = vcombine.high %v303_v18, %v307_v19  ;;  %v5031_v24 = vld [vmem:[#allocation2 + $0xf4] ss:$24 sps:$4 sm:$0xff]   ;;  %v362_v16 = vld [vmem:[#allocation5 + $0x820] sm:$0xff] }
  0x83   :  { %2731 = vmatmul.mubr.bf16.gmra.mrb[4].mxu0 %v5021_v27  ;;  %3070 = vmatmul.mubr.bf16.gmra.mrb[4].mxu1 %v5021_v27  ;;  %v311_v27 = vld [vmem:[#allocation5 + $0x688] sm:$0xff] }
  0x84   :  { %2806 = vmatpush1.bf16.msra.mxu0 %v4382_v30  ;;  %3145 = vmatpush1.bf16.msra.mxu1 %v4384_v31  ;;  %v4440_v30 = vcombine.low %v303_v18, %v307_v19  ;;  %v4447_v31 = vcombine.high %v310_v25, %v314_v26  ;;  %v363_v18 = vld [vmem:[#allocation5 + $0x828] sm:$0xff] }
  0x85   :  { %2807 = vmatprep.subr.bf16.mxu0 %v4391_v32  ;;  %3146 = vmatprep.subr.bf16.mxu1 %v4393_v33  ;;  %v4449_v32 = vcombine.high %v311_v27, %v315_v28  ;;  %v318_v33 = vld [vmem:[#allocation5 + $0x6c0] sm:$0xff]  ;;  %v367_v26 = vld [vmem:[#allocation5 + $0x848] sm:$0xff] }
  0x86   :  { %2740 = vmatprep.mubr.bf16.mxu0 %v5022_v34  ;;  %3079 = vmatprep.mubr.bf16.mxu1 %v5022_v34  ;;  %v322_v34 = vld [vmem:[#allocation5 + $0x6e0] sm:$0xff] }
  0x87   :  { %v4454_v47 = vcombine.low %v318_v33, %v322_v34  ;;  %v5040_v25 = vld [vmem:[#allocation2 + $0x8] ss:$24 sps:$4 sm:$0xff]  }
  0x88   :  { %2808 = vmatpush1.bf16.msra.mxu0 %v4390_v39  ;;  %3147 = vmatpush1.bf16.msra.mxu1 %v4392_v40  ;;  %v4448_v39 = vcombine.low %v311_v27, %v315_v28  ;;  %v4455_v40 = vcombine.high %v318_v33, %v322_v34  ;;  %v371_v27 = vld [vmem:[#allocation5 + $0x868] sm:$0xff]  ;;  %v4494_v28 = vcombine.low %v358_v15, %v362_v16  ;;  %v374_v33 = vld [vmem:[#allocation5 + $0x880] sm:$0xff] }
  0x89   :  { %2809 = vmatprep.subr.bf16.mxu0 %v4399_v41  ;;  %3148 = vmatprep.subr.bf16.mxu1 %v4401_v42  ;;  %v4457_v41 = vcombine.high %v319_v36, %v323_v37  ;;  %v5034_v42 = vld [vmem:[#allocation2 + $0x124] ss:$24 sps:$4 sm:$0xff]  }
  0x8a   :  { %v378_v34 = vld [vmem:[#allocation5 + $0x8a0] sm:$0xff] }
  0x8b   :  { %2741 = vmatmul.mubr.bf16.gmra.mrb[8].mxu0 %v5024_v45  ;;  %3080 = vmatmul.mubr.bf16.gmra.mrb[8].mxu1 %v5024_v45  ;;  %v327_v45 = vld [vmem:[#allocation5 + $0x708] sm:$0xff] }
  0x8c   :  { %2810 = vmatpush1.bf16.msra.mxu0 %v4398_v48  ;;  %3149 = vmatpush1.bf16.msra.mxu1 %v4400_v49  ;;  %v4456_v48 = vcombine.low %v319_v36, %v323_v37  ;;  %v4463_v49 = vcombine.high %v326_v43, %v330_v44  ;;  %v379_v36 = vld [vmem:[#allocation5 + $0x8a8] sm:$0xff]  ;;  %v5045_v43 = vld [vmem:[#allocation2 + $0x38] ss:$24 sps:$4 sm:$0xff]  }
  0x8d   :  { %2811 = vmatprep.subr.bf16.mxu0 %v4407_v50  ;;  %3150 = vmatprep.subr.bf16.mxu1 %v4409_v51  ;;  %v4465_v50 = vcombine.high %v327_v45, %v331_v46  ;;  %v334_v51 = vld [vmem:[#allocation5 + $0x740] sm:$0xff]  ;;  %v383_v44 = vld [vmem:[#allocation5 + $0x8c8] sm:$0xff] }
  0x8e   :  { %2750 = vmatprep.mubr.bf16.mxu0 %v5025_v52  ;;  %3089 = vmatprep.mubr.bf16.mxu1 %v5025_v52  ;;  %v338_v52 = vld [vmem:[#allocation5 + $0x760] sm:$0xff] }
  0x8f   :  { %v4470_v1 = vcombine.low %v334_v51, %v338_v52 }
  0x90   :  { %2812 = vmatpush1.bf16.msra.mxu0 %v4406_v57  ;;  %3151 = vmatpush1.bf16.msra.mxu1 %v4408_v58  ;;  %v4464_v57 = vcombine.low %v327_v45, %v331_v46  ;;  %v4471_v58 = vcombine.high %v334_v51, %v338_v52  ;;  %v387_v45 = vld [vmem:[#allocation5 + $0x8e8] sm:$0xff]  ;;  %v4510_v46 = vcombine.low %v374_v33, %v378_v34  ;;  %v390_v51 = vld [vmem:[#allocation5 + $0x900] sm:$0xff] }
  0x91   :  { %2813 = vmatprep.subr.bf16.mxu0 %v4415_v59  ;;  %3152 = vmatprep.subr.bf16.mxu1 %v4417_v60  ;;  %v4473_v59 = vcombine.high %v335_v54, %v339_v55  ;;  %v5037_v60 = vld [vmem:[#allocation2 + $0x154] ss:$24 sps:$4 sm:$0xff]   ;;  %v394_v52 = vld [vmem:[#allocation5 + $0x920] sm:$0xff] }
  0x93   :  { %2751 = vmatmul.mubr.bf16.gmra.mrb[12].mxu0 %v5027_v63  ;;  %3090 = vmatmul.mubr.bf16.gmra.mrb[12].mxu1 %v5027_v63  ;;  %v343_v63 = vld [vmem:[#allocation5 + $0x788] sm:$0xff] }
  0x94   :  { %2814 = vmatpush1.bf16.msra.mxu0 %v4414_v2  ;;  %3153 = vmatpush1.bf16.msra.mxu1 %v4416_v3  ;;  %v4472_v2 = vcombine.low %v335_v54, %v339_v55  ;;  %v4479_v3 = vcombine.high %v342_v61, %v346_v62  ;;  %v395_v54 = vld [vmem:[#allocation5 + $0x928] sm:$0xff] }
  0x95   :  { %2815 = vmatprep.subr.bf16.mxu0 %v4423_v4  ;;  %3154 = vmatprep.subr.bf16.mxu1 %v4425_v5  ;;  %v4481_v4 = vcombine.high %v343_v63, %v347_v0  ;;  %v350_v5 = vld [vmem:[#allocation5 + $0x7c0] sm:$0xff]  ;;  %v399_v62 = vld [vmem:[#allocation5 + $0x948] sm:$0xff] }
  0x96   :  { %2760 = vmatprep.mubr.bf16.mxu0 %v5028_v6  ;;  %3099 = vmatprep.mubr.bf16.mxu1 %v5028_v6  ;;  %v354_v6 = vld [vmem:[#allocation5 + $0x7e0] sm:$0xff] }
  0x97   :  { %v4486_v19 = vcombine.low %v350_v5, %v354_v6  ;;  %v5048_v61 = vld [vmem:[#allocation2 + $0x68] ss:$24 sps:$4 sm:$0xff]  }
  0x98   :  { %2816 = vmatpush1.bf16.msra.mxu0 %v4422_v11  ;;  %3155 = vmatpush1.bf16.msra.mxu1 %v4424_v12  ;;  %v4480_v11 = vcombine.low %v343_v63, %v347_v0  ;;  %v4487_v12 = vcombine.high %v350_v5, %v354_v6  ;;  %v403_v63 = vld [vmem:[#allocation5 + $0x968] sm:$0xff]  ;;  %v4526_v0 = vcombine.low %v390_v51, %v394_v52  ;;  %v406_v5 = vld [vmem:[#allocation5 + $0x980] sm:$0xff] }
  0x99   :  { %2817 = vmatprep.subr.bf16.mxu0 %v4431_v13  ;;  %3156 = vmatprep.subr.bf16.mxu1 %v4433_v14  ;;  %v4489_v13 = vcombine.high %v351_v8, %v355_v9  ;;  %v5042_v14 = vld [vmem:[#allocation2 + $0xc] ss:$24 sps:$4 sm:$0xff]  }
  0x9a   :  { %v410_v6 = vld [vmem:[#allocation5 + $0x9a0] sm:$0xff] }
  0x9b   :  { %2761 = vmatmul.mubr.bf16.gmra.mrb[16].mxu0 %v5030_v17  ;;  %3100 = vmatmul.mubr.bf16.gmra.mrb[16].mxu1 %v5030_v17  ;;  %v359_v17 = vld [vmem:[#allocation5 + $0x808] sm:$0xff] }
  0x9c   :  { %2818 = vmatpush1.bf16.msra.mxu0 %v4430_v20  ;;  %3157 = vmatpush1.bf16.msra.mxu1 %v4432_v21  ;;  %v4488_v20 = vcombine.low %v351_v8, %v355_v9  ;;  %v4495_v21 = vcombine.high %v358_v15, %v362_v16  ;;  %v411_v8 = vld [vmem:[#allocation5 + $0x9a8] sm:$0xff]  ;;  %v5051_v15 = vld [vmem:[#allocation2 + $0x98] ss:$24 sps:$4 sm:$0xff]  }
  0x9d   :  { %2819 = vmatprep.subr.bf16.mxu0 %v4439_v22  ;;  %3158 = vmatprep.subr.bf16.mxu1 %v4441_v23  ;;  %v4497_v22 = vcombine.high %v359_v17, %v363_v18  ;;  %v366_v23 = vld [vmem:[#allocation5 + $0x840] sm:$0xff]  ;;  %v415_v16 = vld [vmem:[#allocation5 + $0x9c8] sm:$0xff] }
  0x9e   :  { %2770 = vmatprep.mubr.bf16.mxu0 %v5031_v24  ;;  %3109 = vmatprep.mubr.bf16.mxu1 %v5031_v24  ;;  %v370_v24 = vld [vmem:[#allocation5 + $0x860] sm:$0xff] }
  0x9f   :  { %v4502_v37 = vcombine.low %v366_v23, %v370_v24 }
  0xa0   :  { %2820 = vmatpush1.bf16.msra.mxu0 %v4438_v29  ;;  %3159 = vmatpush1.bf16.msra.mxu1 %v4440_v30  ;;  %v4496_v29 = vcombine.low %v359_v17, %v363_v18  ;;  %v4503_v30 = vcombine.high %v366_v23, %v370_v24  ;;  %v419_v17 = vld [vmem:[#allocation5 + $0x9e8] sm:$0xff]  ;;  %v4542_v18 = vcombine.low %v406_v5, %v410_v6  ;;  %v422_v23 = vld [vmem:[#allocation5 + $0xa00] sm:$0xff] }
  0xa1   :  { %2821 = vmatprep.subr.bf16.mxu0 %v4447_v31  ;;  %3160 = vmatprep.subr.bf16.mxu1 %v4449_v32  ;;  %v4505_v31 = vcombine.high %v367_v26, %v371_v27  ;;  %v5043_v32 = vld [vmem:[#allocation2 + $0x3c] ss:$24 sps:$4 sm:$0xff]   ;;  %v426_v24 = vld [vmem:[#allocation5 + $0xa20] sm:$0xff] }
  0xa3   :  { %2771 = vmatmul.mubr.bf16.gmra.mrb[20].mxu0 %v5033_v35  ;;  %3110 = vmatmul.mubr.bf16.gmra.mrb[20].mxu1 %v5033_v35  ;;  %v375_v35 = vld [vmem:[#allocation5 + $0x888] sm:$0xff] }
  0xa4   :  { %2822 = vmatpush1.bf16.msra.mxu0 %v4446_v38  ;;  %3161 = vmatpush1.bf16.msra.mxu1 %v4448_v39  ;;  %v4504_v38 = vcombine.low %v367_v26, %v371_v27  ;;  %v4511_v39 = vcombine.high %v374_v33, %v378_v34  ;;  %v427_v26 = vld [vmem:[#allocation5 + $0xa28] sm:$0xff] }
  0xa5   :  { %2823 = vmatprep.subr.bf16.mxu0 %v4455_v40  ;;  %3162 = vmatprep.subr.bf16.mxu1 %v4457_v41  ;;  %v4513_v40 = vcombine.high %v375_v35, %v379_v36  ;;  %v382_v41 = vld [vmem:[#allocation5 + $0x8c0] sm:$0xff]  ;;  %v431_v34 = vld [vmem:[#allocation5 + $0xa48] sm:$0xff] }
  0xa6   :  { %2780 = vmatprep.mubr.bf16.mxu0 %v5034_v42  ;;  %3119 = vmatprep.mubr.bf16.mxu1 %v5034_v42  ;;  %v386_v42 = vld [vmem:[#allocation5 + $0x8e0] sm:$0xff] }
  0xa7   :  { %v4518_v55 = vcombine.low %v382_v41, %v386_v42  ;;  %v5054_v33 = vld [vmem:[#allocation2 + $0xc8] ss:$24 sps:$4 sm:$0xff]  }
  0xa8   :  { %2824 = vmatpush1.bf16.msra.mxu0 %v4454_v47  ;;  %3163 = vmatpush1.bf16.msra.mxu1 %v4456_v48  ;;  %v4512_v47 = vcombine.low %v375_v35, %v379_v36  ;;  %v4519_v48 = vcombine.high %v382_v41, %v386_v42  ;;  %v435_v35 = vld [vmem:[#allocation5 + $0xa68] sm:$0xff]  ;;  %v4558_v36 = vcombine.low %v422_v23, %v426_v24  ;;  %v438_v41 = vld [vmem:[#allocation5 + $0xa80] sm:$0xff] }
  0xa9   :  { %2825 = vmatprep.subr.bf16.mxu0 %v4463_v49  ;;  %3164 = vmatprep.subr.bf16.mxu1 %v4465_v50  ;;  %v4521_v49 = vcombine.high %v383_v44, %v387_v45  ;;  %v5046_v50 = vld [vmem:[#allocation2 + $0x6c] ss:$24 sps:$4 sm:$0xff]  }
  0xaa   :  { %v442_v42 = vld [vmem:[#allocation5 + $0xaa0] sm:$0xff] }
  0xab   :  { %2781 = vmatmul.mubr.bf16.gmra.mrb[24].mxu0 %v5036_v53  ;;  %3120 = vmatmul.mubr.bf16.gmra.mrb[24].mxu1 %v5036_v53  ;;  %v391_v53 = vld [vmem:[#allocation5 + $0x908] sm:$0xff] }
  0xac   :  { %2826 = vmatpush1.bf16.msra.mxu0 %v4462_v56  ;;  %3165 = vmatpush1.bf16.msra.mxu1 %v4464_v57  ;;  %v4520_v56 = vcombine.low %v383_v44, %v387_v45  ;;  %v4527_v57 = vcombine.high %v390_v51, %v394_v52  ;;  %v443_v44 = vld [vmem:[#allocation5 + $0xaa8] sm:$0xff]  ;;  %v5057_v51 = vld [vmem:[#allocation2 + $0xf8] ss:$24 sps:$4 sm:$0xff]  }
  0xad   :  { %2827 = vmatprep.subr.bf16.mxu0 %v4471_v58  ;;  %3166 = vmatprep.subr.bf16.mxu1 %v4473_v59  ;;  %v4529_v58 = vcombine.high %v391_v53, %v395_v54  ;;  %v398_v59 = vld [vmem:[#allocation5 + $0x940] sm:$0xff]  ;;  %v447_v52 = vld [vmem:[#allocation5 + $0xac8] sm:$0xff] }
  0xae   :  { %2790 = vmatprep.mubr.bf16.mxu0 %v5037_v60  ;;  %3129 = vmatprep.mubr.bf16.mxu1 %v5037_v60  ;;  %v402_v60 = vld [vmem:[#allocation5 + $0x960] sm:$0xff] }
  0xaf   :  { %v4534_v9 = vcombine.low %v398_v59, %v402_v60 }
  0xb0   :  { %2828 = vmatpush1.bf16.msra.mxu0 %v4470_v1  ;;  %3167 = vmatpush1.bf16.msra.mxu1 %v4472_v2  ;;  %v4528_v1 = vcombine.low %v391_v53, %v395_v54  ;;  %v4535_v2 = vcombine.high %v398_v59, %v402_v60  ;;  %v451_v53 = vld [vmem:[#allocation5 + $0xae8] sm:$0xff]  ;;  %v4574_v54 = vcombine.low %v438_v41, %v442_v42  ;;  %v454_v59 = vld [vmem:[#allocation5 + $0xb00] sm:$0xff] }
  0xb1   :  { %2829 = vmatprep.subr.bf16.mxu0 %v4479_v3  ;;  %3168 = vmatprep.subr.bf16.mxu1 %v4481_v4  ;;  %v4537_v3 = vcombine.high %v399_v62, %v403_v63  ;;  %v5049_v4 = vld [vmem:[#allocation2 + $0x9c] ss:$24 sps:$4 sm:$0xff]   ;;  %v458_v60 = vld [vmem:[#allocation5 + $0xb20] sm:$0xff] }
  0xb3   :  { %2791 = vmatmul.mubr.bf16.gmra.mrb[28].mxu0 %v5039_v7  ;;  %3130 = vmatmul.mubr.bf16.gmra.mrb[28].mxu1 %v5039_v7  ;;  %v407_v7 = vld [vmem:[#allocation5 + $0x988] sm:$0xff] }
  0xb4   :  { %2830 = vmatpush1.bf16.msra.mxu0 %v4478_v10  ;;  %3169 = vmatpush1.bf16.msra.mxu1 %v4480_v11  ;;  %v4536_v10 = vcombine.low %v399_v62, %v403_v63  ;;  %v4543_v11 = vcombine.high %v406_v5, %v410_v6  ;;  %v459_v62 = vld [vmem:[#allocation5 + $0xb28] sm:$0xff] }
  0xb5   :  { %2831 = vmatprep.subr.bf16.mxu0 %v4487_v12  ;;  %3170 = vmatprep.subr.bf16.mxu1 %v4489_v13  ;;  %v4545_v12 = vcombine.high %v407_v7, %v411_v8  ;;  %v414_v13 = vld [vmem:[#allocation5 + $0x9c0] sm:$0xff]  ;;  %v463_v6 = vld [vmem:[#allocation5 + $0xb48] sm:$0xff] }
  0xb6   :  { %2833 = vmatprep.mubr.bf16.mxu0 %v5042_v14  ;;  %3172 = vmatprep.mubr.bf16.mxu1 %v5042_v14  ;;  %v418_v14 = vld [vmem:[#allocation5 + $0x9e0] sm:$0xff] }
  0xb7   :  { %v4550_v27 = vcombine.low %v414_v13, %v418_v14  ;;  %v5060_v5 = vld [vmem:[#allocation2 + $0x128] ss:$24 sps:$4 sm:$0xff]  }
  0xb8   :  { %2832 = vmatpush1.bf16.msra.mxu0 %v4486_v19  ;;  %3171 = vmatpush1.bf16.msra.mxu1 %v4488_v20  ;;  %v4544_v19 = vcombine.low %v407_v7, %v411_v8  ;;  %v4551_v20 = vcombine.high %v414_v13, %v418_v14  ;;  %v467_v7 = vld [vmem:[#allocation5 + $0xb68] sm:$0xff]  ;;  %v4590_v8 = vcombine.low %v454_v59, %v458_v60  ;;  %v470_v13 = vld [vmem:[#allocation5 + $0xb80] sm:$0xff] }
  0xb9   :  { %2914 = vmatprep.subr.bf16.mxu0 %v4495_v21  ;;  %3253 = vmatprep.subr.bf16.mxu1 %v4497_v22  ;;  %v4553_v21 = vcombine.high %v415_v16, %v419_v17  ;;  %v5052_v22 = vld [vmem:[#allocation2 + $0xcc] ss:$24 sps:$4 sm:$0xff]  }
  0xba   :  { %v474_v14 = vld [vmem:[#allocation5 + $0xba0] sm:$0xff] }
  0xbb   :  { %2834 = vmatmul.mubr.bf16.vlgmr.msra.gmra.mrb[0].mxu0 %v5040_v25  ;;  %3173 = vmatmul.mubr.bf16.vlgmr.msra.gmra.mrb[0].mxu1 %v5040_v25  ;;  %v423_v25 = vld [vmem:[#allocation5 + $0xa08] sm:$0xff] }
  0xbc   :  { %2915 = vmatpush1.bf16.msra.mxu0 %v4494_v28  ;;  %3254 = vmatpush1.bf16.msra.mxu1 %v4496_v29  ;;  %v4552_v28 = vcombine.low %v415_v16, %v419_v17  ;;  %v4559_v29 = vcombine.high %v422_v23, %v426_v24  ;;  %v475_v16 = vld [vmem:[#allocation5 + $0xba8] sm:$0xff]  ;;  %v5063_v23 = vld [vmem:[#allocation2 + $0x158] ss:$24 sps:$4 sm:$0xff]  }
  0xbd   :  { %2916 = vmatprep.subr.bf16.mxu0 %v4503_v30  ;;  %3255 = vmatprep.subr.bf16.mxu1 %v4505_v31  ;;  %v4561_v30 = vcombine.high %v423_v25, %v427_v26  ;;  %v430_v31 = vld [vmem:[#allocation5 + $0xa40] sm:$0xff]  ;;  %v479_v24 = vld [vmem:[#allocation5 + $0xbc8] sm:$0xff] }
  0xbe   :  { %2843 = vmatprep.mubr.bf16.mxu0 %v5043_v32  ;;  %3182 = vmatprep.mubr.bf16.mxu1 %v5043_v32  ;;  %v434_v32 = vld [vmem:[#allocation5 + $0xa60] sm:$0xff] }
  0xbf   :  { %v4566_v45 = vcombine.low %v430_v31, %v434_v32 }
  0xc0   :  { %2917 = vmatpush1.bf16.msra.mxu0 %v4502_v37  ;;  %3256 = vmatpush1.bf16.msra.mxu1 %v4504_v38  ;;  %v4560_v37 = vcombine.low %v423_v25, %v427_v26  ;;  %v4567_v38 = vcombine.high %v430_v31, %v434_v32  ;;  %v483_v25 = vld [vmem:[#allocation5 + $0xbe8] sm:$0xff]  ;;  %v4606_v26 = vcombine.low %v470_v13, %v474_v14  ;;  %v104_v31 = vld [vmem:[#allocation5 + $0x10] sm:$0xff] }
  0xc1   :  { %2918 = vmatprep.subr.bf16.mxu0 %v4511_v39  ;;  %3257 = vmatprep.subr.bf16.mxu1 %v4513_v40  ;;  %v4569_v39 = vcombine.high %v431_v34, %v435_v35  ;;  %v5055_v40 = vld [vmem:[#allocation2 + $0xfc] ss:$24 sps:$4 sm:$0xff]  }
  0xc2   :  { %v108_v32 = vld [vmem:[#allocation5 + $0x30] sm:$0xff] }
  0xc3   :  { %2844 = vmatmul.mubr.bf16.gmra.mrb[4].mxu0 %v5045_v43  ;;  %3183 = vmatmul.mubr.bf16.gmra.mrb[4].mxu1 %v5045_v43  ;;  %v439_v43 = vld [vmem:[#allocation5 + $0xa88] sm:$0xff] }
  0xc4   :  { %2919 = vmatpush1.bf16.msra.mxu0 %v4510_v46  ;;  %3258 = vmatpush1.bf16.msra.mxu1 %v4512_v47  ;;  %v4568_v46 = vcombine.low %v431_v34, %v435_v35  ;;  %v4575_v47 = vcombine.high %v438_v41, %v442_v42  ;;  %v109_v34 = vld [vmem:[#allocation5 + $0x38] sm:$0xff]  ;;  %v5064_v41 = vld [vmem:[#allocation2 + $0x10] ss:$24 sps:$4 sm:$0xff]  }
  0xc5   :  { %2920 = vmatprep.subr.bf16.mxu0 %v4519_v48  ;;  %3259 = vmatprep.subr.bf16.mxu1 %v4521_v49  ;;  %v4577_v48 = vcombine.high %v439_v43, %v443_v44  ;;  %v446_v49 = vld [vmem:[#allocation5 + $0xac0] sm:$0xff]  ;;  %v113_v42 = vld [vmem:[#allocation5 + $0x58] sm:$0xff] }
  0xc6   :  { %2853 = vmatprep.mubr.bf16.mxu0 %v5046_v50  ;;  %3192 = vmatprep.mubr.bf16.mxu1 %v5046_v50  ;;  %v450_v50 = vld [vmem:[#allocation5 + $0xae0] sm:$0xff] }
  0xc7   :  { %v4582_v63 = vcombine.low %v446_v49, %v450_v50 }
  0xc8   :  { %2921 = vmatpush1.bf16.msra.mxu0 %v4518_v55  ;;  %3260 = vmatpush1.bf16.msra.mxu1 %v4520_v56  ;;  %v4576_v55 = vcombine.low %v439_v43, %v443_v44  ;;  %v4583_v56 = vcombine.high %v446_v49, %v450_v50  ;;  %v117_v43 = vld [vmem:[#allocation5 + $0x78] sm:$0xff]  ;;  %v4242_v44 = vcombine.low %v104_v31, %v108_v32  ;;  %v120_v49 = vld [vmem:[#allocation5 + $0x90] sm:$0xff] }
  0xc9   :  { %2922 = vmatprep.subr.bf16.mxu0 %v4527_v57  ;;  %3261 = vmatprep.subr.bf16.mxu1 %v4529_v58  ;;  %v4585_v57 = vcombine.high %v447_v52, %v451_v53  ;;  %v5058_v58 = vld [vmem:[#allocation2 + $0x12c] ss:$24 sps:$4 sm:$0xff]   ;;  %v124_v50 = vld [vmem:[#allocation5 + $0xb0] sm:$0xff] }
  0xcb   :  { %2854 = vmatmul.mubr.bf16.gmra.mrb[8].mxu0 %v5048_v61  ;;  %3193 = vmatmul.mubr.bf16.gmra.mrb[8].mxu1 %v5048_v61  ;;  %v455_v61 = vld [vmem:[#allocation5 + $0xb08] sm:$0xff] }
  0xcc   :  { %2923 = vmatpush1.bf16.msra.mxu0 %v4526_v0  ;;  %3262 = vmatpush1.bf16.msra.mxu1 %v4528_v1  ;;  %v4584_v0 = vcombine.low %v447_v52, %v451_v53  ;;  %v4591_v1 = vcombine.high %v454_v59, %v458_v60  ;;  %v125_v52 = vld [vmem:[#allocation5 + $0xb8] sm:$0xff] }
  0xcd   :  { %2924 = vmatprep.subr.bf16.mxu0 %v4535_v2  ;;  %3263 = vmatprep.subr.bf16.mxu1 %v4537_v3  ;;  %v4593_v2 = vcombine.high %v455_v61, %v459_v62  ;;  %v462_v3 = vld [vmem:[#allocation5 + $0xb40] sm:$0xff]  ;;  %v129_v60 = vld [vmem:[#allocation5 + $0xd8] sm:$0xff] }
  0xce   :  { %2863 = vmatprep.mubr.bf16.mxu0 %v5049_v4  ;;  %3202 = vmatprep.mubr.bf16.mxu1 %v5049_v4  ;;  %v466_v4 = vld [vmem:[#allocation5 + $0xb60] sm:$0xff] }
  0xcf   :  { %v4598_v17 = vcombine.low %v462_v3, %v466_v4  ;;  %v5069_v59 = vld [vmem:[#allocation2 + $0x40] ss:$24 sps:$4 sm:$0xff]  }
  0xd0   :  { %2925 = vmatpush1.bf16.msra.mxu0 %v4534_v9  ;;  %3264 = vmatpush1.bf16.msra.mxu1 %v4536_v10  ;;  %v4592_v9 = vcombine.low %v455_v61, %v459_v62  ;;  %v4599_v10 = vcombine.high %v462_v3, %v466_v4  ;;  %v133_v61 = vld [vmem:[#allocation5 + $0xf8] sm:$0xff]  ;;  %v4258_v62 = vcombine.low %v120_v49, %v124_v50  ;;  %v136_v3 = vld [vmem:[#allocation5 + $0x110] sm:$0xff] }
  0xd1   :  { %2926 = vmatprep.subr.bf16.mxu0 %v4543_v11  ;;  %3265 = vmatprep.subr.bf16.mxu1 %v4545_v12  ;;  %v4601_v11 = vcombine.high %v463_v6, %v467_v7  ;;  %v5061_v12 = vld [vmem:[#allocation2 + $0x15c] ss:$24 sps:$4 sm:$0xff]  }
  0xd2   :  { %v140_v4 = vld [vmem:[#allocation5 + $0x130] sm:$0xff] }
  0xd3   :  { %2864 = vmatmul.mubr.bf16.gmra.mrb[12].mxu0 %v5051_v15  ;;  %3203 = vmatmul.mubr.bf16.gmra.mrb[12].mxu1 %v5051_v15  ;;  %v471_v15 = vld [vmem:[#allocation5 + $0xb88] sm:$0xff] }
  0xd4   :  { %2927 = vmatpush1.bf16.msra.mxu0 %v4542_v18  ;;  %3266 = vmatpush1.bf16.msra.mxu1 %v4544_v19  ;;  %v4600_v18 = vcombine.low %v463_v6, %v467_v7  ;;  %v4607_v19 = vcombine.high %v470_v13, %v474_v14  ;;  %v141_v6 = vld [vmem:[#allocation5 + $0x138] sm:$0xff]  ;;  %v5072_v13 = vld [vmem:[#allocation2 + $0x70] ss:$24 sps:$4 sm:$0xff]  }
  0xd5   :  { %2928 = vmatprep.subr.bf16.mxu0 %v4551_v20  ;;  %3267 = vmatprep.subr.bf16.mxu1 %v4553_v21  ;;  %v4609_v20 = vcombine.high %v471_v15, %v475_v16  ;;  %v478_v21 = vld [vmem:[#allocation5 + $0xbc0] sm:$0xff]  ;;  %v145_v14 = vld [vmem:[#allocation5 + $0x158] sm:$0xff] }
  0xd6   :  { %2873 = vmatprep.mubr.bf16.mxu0 %v5052_v22  ;;  %3212 = vmatprep.mubr.bf16.mxu1 %v5052_v22  ;;  %v482_v22 = vld [vmem:[#allocation5 + $0xbe0] sm:$0xff] }
  0xd7   :  { %v4614_v35 = vcombine.low %v478_v21, %v482_v22 }
  0xd8   :  { %2929 = vmatpush1.bf16.msra.mxu0 %v4550_v27  ;;  %3268 = vmatpush1.bf16.msra.mxu1 %v4552_v28  ;;  %v4608_v27 = vcombine.low %v471_v15, %v475_v16  ;;  %v4615_v28 = vcombine.high %v478_v21, %v482_v22  ;;  %v149_v15 = vld [vmem:[#allocation5 + $0x178] sm:$0xff]  ;;  %v4274_v16 = vcombine.low %v136_v3, %v140_v4  ;;  %v152_v21 = vld [vmem:[#allocation5 + $0x190] sm:$0xff] }
  0xd9   :  { %2930 = vmatprep.subr.bf16.mxu0 %v4559_v29  ;;  %3269 = vmatprep.subr.bf16.mxu1 %v4561_v30  ;;  %v4617_v29 = vcombine.high %v479_v24, %v483_v25  ;;  %v5066_v30 = vld [vmem:[#allocation2 + $0x14] ss:$24 sps:$4 sm:$0xff]  }
  0xda   :  { %v156_v22 = vld [vmem:[#allocation5 + $0x1b0] sm:$0xff] }
  0xdb   :  { %2874 = vmatmul.mubr.bf16.gmra.mrb[16].mxu0 %v5054_v33  ;;  %3213 = vmatmul.mubr.bf16.gmra.mrb[16].mxu1 %v5054_v33  ;;  %v105_v33 = vld [vmem:[#allocation5 + $0x18] sm:$0xff] }
  0xdc   :  { %2931 = vmatpush1.bf16.msra.mxu0 %v4558_v36  ;;  %3270 = vmatpush1.bf16.msra.mxu1 %v4560_v37  ;;  %v4616_v36 = vcombine.low %v479_v24, %v483_v25  ;;  %v4243_v37 = vcombine.high %v104_v31, %v108_v32  ;;  %v157_v24 = vld [vmem:[#allocation5 + $0x1b8] sm:$0xff] }
  0xdd   :  { %2932 = vmatprep.subr.bf16.mxu0 %v4567_v38  ;;  %3271 = vmatprep.subr.bf16.mxu1 %v4569_v39  ;;  %v4245_v38 = vcombine.high %v105_v33, %v109_v34  ;;  %v112_v39 = vld [vmem:[#allocation5 + $0x50] sm:$0xff]  ;;  %v5075_v31 = vld [vmem:[#allocation2 + $0xa0] ss:$24 sps:$4 sm:$0xff]  }
  0xde   :  { %2883 = vmatprep.mubr.bf16.mxu0 %v5055_v40  ;;  %3222 = vmatprep.mubr.bf16.mxu1 %v5055_v40  ;;  %v116_v40 = vld [vmem:[#allocation5 + $0x70] sm:$0xff]  ;;  %v161_v32 = vld [vmem:[#allocation5 + $0x1d8] sm:$0xff] }
  0xdf   :  { %v4250_v53 = vcombine.low %v112_v39, %v116_v40 }
  0xe0   :  { %2933 = vmatpush1.bf16.msra.mxu0 %v4566_v45  ;;  %3272 = vmatpush1.bf16.msra.mxu1 %v4568_v46  ;;  %v4244_v45 = vcombine.low %v105_v33, %v109_v34  ;;  %v4251_v46 = vcombine.high %v112_v39, %v116_v40  ;;  %v165_v33 = vld [vmem:[#allocation5 + $0x1f8] sm:$0xff]  ;;  %v4290_v34 = vcombine.low %v152_v21, %v156_v22  ;;  %v168_v39 = vld [vmem:[#allocation5 + $0x210] sm:$0xff] }
  0xe1   :  { %2934 = vmatprep.subr.bf16.mxu0 %v4575_v47  ;;  %3273 = vmatprep.subr.bf16.mxu1 %v4577_v48  ;;  %v4253_v47 = vcombine.high %v113_v42, %v117_v43  ;;  %v5067_v48 = vld [vmem:[#allocation2 + $0x44] ss:$24 sps:$4 sm:$0xff]   ;;  %v172_v40 = vld [vmem:[#allocation5 + $0x230] sm:$0xff] }
  0xe3   :  { %2884 = vmatmul.mubr.bf16.gmra.mrb[20].mxu0 %v5057_v51  ;;  %3223 = vmatmul.mubr.bf16.gmra.mrb[20].mxu1 %v5057_v51  ;;  %v121_v51 = vld [vmem:[#allocation5 + $0x98] sm:$0xff] }
  0xe4   :  { %2935 = vmatpush1.bf16.msra.mxu0 %v4574_v54  ;;  %3274 = vmatpush1.bf16.msra.mxu1 %v4576_v55  ;;  %v4252_v54 = vcombine.low %v113_v42, %v117_v43  ;;  %v4259_v55 = vcombine.high %v120_v49, %v124_v50  ;;  %v173_v42 = vld [vmem:[#allocation5 + $0x238] sm:$0xff]  ;;  %v5078_v49 = vld [vmem:[#allocation2 + $0xd0] ss:$24 sps:$4 sm:$0xff]  }
  0xe5   :  { %2936 = vmatprep.subr.bf16.mxu0 %v4583_v56  ;;  %3275 = vmatprep.subr.bf16.mxu1 %v4585_v57  ;;  %v4261_v56 = vcombine.high %v121_v51, %v125_v52  ;;  %v128_v57 = vld [vmem:[#allocation5 + $0xd0] sm:$0xff]  ;;  %v177_v50 = vld [vmem:[#allocation5 + $0x258] sm:$0xff] }
  0xe6   :  { %2893 = vmatprep.mubr.bf16.mxu0 %v5058_v58  ;;  %3232 = vmatprep.mubr.bf16.mxu1 %v5058_v58  ;;  %v132_v58 = vld [vmem:[#allocation5 + $0xf0] sm:$0xff] }
  0xe7   :  { %v4266_v7 = vcombine.low %v128_v57, %v132_v58 }
  0xe8   :  { %2937 = vmatpush1.bf16.msra.mxu0 %v4582_v63  ;;  %3276 = vmatpush1.bf16.msra.mxu1 %v4584_v0  ;;  %v4260_v63 = vcombine.low %v121_v51, %v125_v52  ;;  %v4267_v0 = vcombine.high %v128_v57, %v132_v58  ;;  %v181_v51 = vld [vmem:[#allocation5 + $0x278] sm:$0xff]  ;;  %v4306_v52 = vcombine.low %v168_v39, %v172_v40  ;;  %v184_v57 = vld [vmem:[#allocation5 + $0x290] sm:$0xff] }
  0xe9   :  { %2938 = vmatprep.subr.bf16.mxu0 %v4591_v1  ;;  %3277 = vmatprep.subr.bf16.mxu1 %v4593_v2  ;;  %v4269_v1 = vcombine.high %v129_v60, %v133_v61  ;;  %v5070_v2 = vld [vmem:[#allocation2 + $0x74] ss:$24 sps:$4 sm:$0xff]  }
  0xea   :  { %v188_v58 = vld [vmem:[#allocation5 + $0x2b0] sm:$0xff] }
  0xeb   :  { %2894 = vmatmul.mubr.bf16.gmra.mrb[24].mxu0 %v5060_v5  ;;  %3233 = vmatmul.mubr.bf16.gmra.mrb[24].mxu1 %v5060_v5  ;;  %v137_v5 = vld [vmem:[#allocation5 + $0x118] sm:$0xff] }
  0xec   :  { %2939 = vmatpush1.bf16.msra.mxu0 %v4590_v8  ;;  %3278 = vmatpush1.bf16.msra.mxu1 %v4592_v9  ;;  %v4268_v8 = vcombine.low %v129_v60, %v133_v61  ;;  %v4275_v9 = vcombine.high %v136_v3, %v140_v4  ;;  %v189_v60 = vld [vmem:[#allocation5 + $0x2b8] sm:$0xff] }
  0xed   :  { %2940 = vmatprep.subr.bf16.mxu0 %v4599_v10  ;;  %3279 = vmatprep.subr.bf16.mxu1 %v4601_v11  ;;  %v4277_v10 = vcombine.high %v137_v5, %v141_v6  ;;  %v144_v11 = vld [vmem:[#allocation5 + $0x150] sm:$0xff]  ;;  %v5081_v3 = vld [vmem:[#allocation2 + $0x100] ss:$24 sps:$4 sm:$0xff]  }
  0xee   :  { %2903 = vmatprep.mubr.bf16.mxu0 %v5061_v12  ;;  %3242 = vmatprep.mubr.bf16.mxu1 %v5061_v12  ;;  %v148_v12 = vld [vmem:[#allocation5 + $0x170] sm:$0xff]  ;;  %v193_v4 = vld [vmem:[#allocation5 + $0x2d8] sm:$0xff] }
  0xef   :  { %v4282_v25 = vcombine.low %v144_v11, %v148_v12 }
  0xf0   :  { %2941 = vmatpush1.bf16.msra.mxu0 %v4598_v17  ;;  %3280 = vmatpush1.bf16.msra.mxu1 %v4600_v18  ;;  %v4276_v17 = vcombine.low %v137_v5, %v141_v6  ;;  %v4283_v18 = vcombine.high %v144_v11, %v148_v12  ;;  %v197_v5 = vld [vmem:[#allocation5 + $0x2f8] sm:$0xff]  ;;  %v4322_v6 = vcombine.low %v184_v57, %v188_v58  ;;  %v200_v11 = vld [vmem:[#allocation5 + $0x310] sm:$0xff] }
  0xf1   :  { %2942 = vmatprep.subr.bf16.mxu0 %v4607_v19  ;;  %3281 = vmatprep.subr.bf16.mxu1 %v4609_v20  ;;  %v4285_v19 = vcombine.high %v145_v14, %v149_v15  ;;  %v5073_v20 = vld [vmem:[#allocation2 + $0xa4] ss:$24 sps:$4 sm:$0xff]   ;;  %v204_v12 = vld [vmem:[#allocation5 + $0x330] sm:$0xff] }
  0xf3   :  { %2904 = vmatmul.mubr.bf16.gmra.mrb[28].mxu0 %v5063_v23  ;;  %3243 = vmatmul.mubr.bf16.gmra.mrb[28].mxu1 %v5063_v23  ;;  %v153_v23 = vld [vmem:[#allocation5 + $0x198] sm:$0xff] }
  0xf4   :  { %2943 = vmatpush1.bf16.msra.mxu0 %v4606_v26  ;;  %3282 = vmatpush1.bf16.msra.mxu1 %v4608_v27  ;;  %v4284_v26 = vcombine.low %v145_v14, %v149_v15  ;;  %v4291_v27 = vcombine.high %v152_v21, %v156_v22  ;;  %v205_v14 = vld [vmem:[#allocation5 + $0x338] sm:$0xff]  ;;  %v5084_v21 = vld [vmem:[#allocation2 + $0x130] ss:$24 sps:$4 sm:$0xff]  }
  0xf5   :  { %2944 = vmatprep.subr.bf16.mxu0 %v4615_v28  ;;  %3283 = vmatprep.subr.bf16.mxu1 %v4617_v29  ;;  %v4293_v28 = vcombine.high %v153_v23, %v157_v24  ;;  %v160_v29 = vld [vmem:[#allocation5 + $0x1d0] sm:$0xff]  ;;  %v209_v22 = vld [vmem:[#allocation5 + $0x358] sm:$0xff] }
  0xf6   :  { %2946 = vmatprep.mubr.bf16.mxu0 %v5066_v30  ;;  %3285 = vmatprep.mubr.bf16.mxu1 %v5066_v30  ;;  %v164_v30 = vld [vmem:[#allocation5 + $0x1f0] sm:$0xff] }
  0xf7   :  { %v4298_v43 = vcombine.low %v160_v29, %v164_v30 }
  0xf8   :  { %2945 = vmatpush1.bf16.msra.mxu0 %v4614_v35  ;;  %3284 = vmatpush1.bf16.msra.mxu1 %v4616_v36  ;;  %v4292_v35 = vcombine.low %v153_v23, %v157_v24  ;;  %v4299_v36 = vcombine.high %v160_v29, %v164_v30  ;;  %v213_v23 = vld [vmem:[#allocation5 + $0x378] sm:$0xff]  ;;  %v4338_v24 = vcombine.low %v200_v11, %v204_v12  ;;  %v216_v29 = vld [vmem:[#allocation5 + $0x390] sm:$0xff] }
  0xf9   :  { %3366 = vmatprep.subr.bf16.mxu0 %v4243_v37  ;;  %3705 = vmatprep.subr.bf16.mxu1 %v4245_v38  ;;  %v4301_v37 = vcombine.high %v161_v32, %v165_v33  ;;  %v5076_v38 = vld [vmem:[#allocation2 + $0xd4] ss:$24 sps:$4 sm:$0xff]  }
  0xfa   :  { %v220_v30 = vld [vmem:[#allocation5 + $0x3b0] sm:$0xff] }
  0xfb   :  { %2947 = vmatmul.mubr.bf16.vlgmr.msra.gmra.mrb[0].mxu0 %v5064_v41  ;;  %3286 = vmatmul.mubr.bf16.vlgmr.msra.gmra.mrb[0].mxu1 %v5064_v41  ;;  %v169_v41 = vld [vmem:[#allocation5 + $0x218] sm:$0xff] }
  0xfc   :  { %3367 = vmatpush1.bf16.msra.mxu0 %v4242_v44  ;;  %3706 = vmatpush1.bf16.msra.mxu1 %v4244_v45  ;;  %v4300_v44 = vcombine.low %v161_v32, %v165_v33  ;;  %v4307_v45 = vcombine.high %v168_v39, %v172_v40  ;;  %v221_v32 = vld [vmem:[#allocation5 + $0x3b8] sm:$0xff] }
  0xfd   :  { %3368 = vmatprep.subr.bf16.mxu0 %v4251_v46  ;;  %3707 = vmatprep.subr.bf16.mxu1 %v4253_v47  ;;  %v4309_v46 = vcombine.high %v169_v41, %v173_v42  ;;  %v176_v47 = vld [vmem:[#allocation5 + $0x250] sm:$0xff]  ;;  %v5087_v39 = vld [vmem:[#allocation2 + $0x160] ss:$24 sps:$4 sm:$0xff]  }
  0xfe   :  { %2956 = vmatprep.mubr.bf16.mxu0 %v5067_v48  ;;  %3295 = vmatprep.mubr.bf16.mxu1 %v5067_v48  ;;  %v180_v48 = vld [vmem:[#allocation5 + $0x270] sm:$0xff]  ;;  %v225_v40 = vld [vmem:[#allocation5 + $0x3d8] sm:$0xff] }
  0xff   :  { %v4314_v61 = vcombine.low %v176_v47, %v180_v48 }
 0x100   :  { %3369 = vmatpush1.bf16.msra.mxu0 %v4250_v53  ;;  %3708 = vmatpush1.bf16.msra.mxu1 %v4252_v54  ;;  %v4308_v53 = vcombine.low %v169_v41, %v173_v42  ;;  %v4315_v54 = vcombine.high %v176_v47, %v180_v48  ;;  %v229_v41 = vld [vmem:[#allocation5 + $0x3f8] sm:$0xff]  ;;  %v4354_v42 = vcombine.low %v216_v29, %v220_v30  ;;  %v236_v47 = vld [vmem:[#allocation5 + $0x430] sm:$0xff] }
 0x101   :  { %3370 = vmatprep.subr.bf16.mxu0 %v4259_v55  ;;  %3709 = vmatprep.subr.bf16.mxu1 %v4261_v56  ;;  %v4317_v55 = vcombine.high %v177_v50, %v181_v51  ;;  %v5079_v56 = vld [vmem:[#allocation2 + $0x104] ss:$24 sps:$4 sm:$0xff]  }
 0x102   :  { %v233_v48 = vld [vmem:[#allocation5 + $0x418] sm:$0xff] }
 0x103   :  { %2957 = vmatmul.mubr.bf16.gmra.mrb[4].mxu0 %v5069_v59  ;;  %3296 = vmatmul.mubr.bf16.gmra.mrb[4].mxu1 %v5069_v59  ;;  %v185_v59 = vld [vmem:[#allocation5 + $0x298] sm:$0xff] }
 0x104   :  { %3371 = vmatpush1.bf16.msra.mxu0 %v4258_v62  ;;  %3710 = vmatpush1.bf16.msra.mxu1 %v4260_v63  ;;  %v4316_v62 = vcombine.low %v177_v50, %v181_v51  ;;  %v4323_v63 = vcombine.high %v184_v57, %v188_v58  ;;  %v4364_v51 = vcombine.low %v225_v40, %v229_v41  ;;  %v241_v57 = vld [vmem:[#allocation5 + $0x458] sm:$0xff] }
 0x105   :  { %3372 = vmatprep.subr.bf16.mxu0 %v4267_v0  ;;  %3711 = vmatprep.subr.bf16.mxu1 %v4269_v1  ;;  %v4325_v0 = vcombine.high %v185_v59, %v189_v60  ;;  %v192_v1 = vld [vmem:[#allocation5 + $0x2d0] sm:$0xff]  ;;  %v245_v58 = vld [vmem:[#allocation5 + $0x478] sm:$0xff] }
 0x106   :  { %2966 = vmatprep.mubr.bf16.mxu0 %v5070_v2  ;;  %3305 = vmatprep.mubr.bf16.mxu1 %v5070_v2  ;;  %v196_v2 = vld [vmem:[#allocation5 + $0x2f0] sm:$0xff] }
 0x107   :  { %v4330_v15 = vcombine.low %v192_v1, %v196_v2 }
 0x108   :  { %3373 = vmatpush1.bf16.msra.mxu0 %v4266_v7  ;;  %3712 = vmatpush1.bf16.msra.mxu1 %v4268_v8  ;;  %v4324_v7 = vcombine.low %v185_v59, %v189_v60  ;;  %v4331_v8 = vcombine.high %v192_v1, %v196_v2  ;;  %v5089_v1 = vld [vmem:[#allocation2] ss:$24 sps:$4 sm:$0xff]  }
 0x109   :  { %3374 = vmatprep.subr.bf16.mxu0 %v4275_v9  ;;  %3713 = vmatprep.subr.bf16.mxu1 %v4277_v10  ;;  %v4333_v9 = vcombine.high %v193_v4, %v197_v5  ;;  %v5082_v10 = vld [vmem:[#allocation2 + $0x134] ss:$24 sps:$4 sm:$0xff]   ;;  %v249_v2 = vld [vmem:[#allocation5 + $0x498] sm:$0xff] }
 0x10b   :  { %2967 = vmatmul.mubr.bf16.gmra.mrb[8].mxu0 %v5072_v13  ;;  %3306 = vmatmul.mubr.bf16.gmra.mrb[8].mxu1 %v5072_v13  ;;  %v201_v13 = vld [vmem:[#allocation5 + $0x318] sm:$0xff] }
 0x10c   :  { %3375 = vmatpush1.bf16.msra.mxu0 %v4274_v16  ;;  %3714 = vmatpush1.bf16.msra.mxu1 %v4276_v17  ;;  %v4332_v16 = vcombine.low %v193_v4, %v197_v5  ;;  %v4339_v17 = vcombine.high %v200_v11, %v204_v12  ;;  %v4380_v5 = vcombine.low %v241_v57, %v245_v58  ;;  %v257_v11 = vld [vmem:[#allocation5 + $0x4d8] sm:$0xff] }
 0x10d   :  { %3376 = vmatprep.subr.bf16.mxu0 %v4283_v18  ;;  %3715 = vmatprep.subr.bf16.mxu1 %v4285_v19  ;;  %v4341_v18 = vcombine.high %v201_v13, %v205_v14  ;;  %v208_v19 = vld [vmem:[#allocation5 + $0x350] sm:$0xff]  ;;  %v261_v12 = vld [vmem:[#allocation5 + $0x4f8] sm:$0xff] }
 0x10e   :  { %2976 = vmatprep.mubr.bf16.mxu0 %v5073_v20  ;;  %3315 = vmatprep.mubr.bf16.mxu1 %v5073_v20  ;;  %v212_v20 = vld [vmem:[#allocation5 + $0x370] sm:$0xff] }
 0x10f   :  { %v4346_v33 = vcombine.low %v208_v19, %v212_v20 }
 0x110   :  { %3377 = vmatpush1.bf16.msra.mxu0 %v4282_v25  ;;  %3716 = vmatpush1.bf16.msra.mxu1 %v4284_v26  ;;  %v4340_v25 = vcombine.low %v201_v13, %v205_v14  ;;  %v4347_v26 = vcombine.high %v208_v19, %v212_v20  ;;  %v5091_v19 = vld [vmem:[#allocation2 + $0x30] ss:$24 sps:$4 sm:$0xff]   ;;  %v265_v20 = vld [vmem:[#allocation5 + $0x518] sm:$0xff] }
 0x111   :  { %3378 = vmatprep.subr.bf16.mxu0 %v4291_v27  ;;  %3717 = vmatprep.subr.bf16.mxu1 %v4293_v28  ;;  %v4349_v27 = vcombine.high %v209_v22, %v213_v23  ;;  %v5085_v28 = vld [vmem:[#allocation2 + $0x164] ss:$24 sps:$4 sm:$0xff]  }
 0x113   :  { %2977 = vmatmul.mubr.bf16.gmra.mrb[12].mxu0 %v5075_v31  ;;  %3316 = vmatmul.mubr.bf16.gmra.mrb[12].mxu1 %v5075_v31  ;;  %v217_v31 = vld [vmem:[#allocation5 + $0x398] sm:$0xff] }
 0x114   :  { %3379 = vmatpush1.bf16.msra.mxu0 %v4290_v34  ;;  %3718 = vmatpush1.bf16.msra.mxu1 %v4292_v35  ;;  %v4348_v34 = vcombine.low %v209_v22, %v213_v23  ;;  %v4355_v35 = vcombine.high %v216_v29, %v220_v30  ;;  %v4396_v23 = vcombine.low %v257_v11, %v261_v12  ;;  %v273_v29 = vld [vmem:[#allocation5 + $0x558] sm:$0xff] }
 0x115   :  { %3380 = vmatprep.subr.bf16.mxu0 %v4299_v36  ;;  %3719 = vmatprep.subr.bf16.mxu1 %v4301_v37  ;;  %v4357_v36 = vcombine.high %v217_v31, %v221_v32  ;;  %v224_v37 = vld [vmem:[#allocation5 + $0x3d0] sm:$0xff]  ;;  %v277_v30 = vld [vmem:[#allocation5 + $0x578] sm:$0xff] }
 0x116   :  { %2986 = vmatprep.mubr.bf16.mxu0 %v5076_v38  ;;  %3325 = vmatprep.mubr.bf16.mxu1 %v5076_v38  ;;  %v228_v38 = vld [vmem:[#allocation5 + $0x3f0] sm:$0xff] }
 0x117   :  { %v4362_v50 = vcombine.low %v224_v37, %v228_v38 }
 0x118   :  { %3381 = vmatpush1.bf16.msra.mxu0 %v4298_v43  ;;  %3720 = vmatpush1.bf16.msra.mxu1 %v4300_v44  ;;  %v4356_v43 = vcombine.low %v217_v31, %v221_v32  ;;  %v4363_v44 = vcombine.high %v224_v37, %v228_v38  ;;  %v5093_v37 = vld [vmem:[#allocation2 + $0x60] ss:$24 sps:$4 sm:$0xff]  }
 0x119   :  { %3382 = vmatprep.subr.bf16.mxu0 %v4307_v45  ;;  %3721 = vmatprep.subr.bf16.mxu1 %v4309_v46  ;;  %v4365_v45 = vcombine.high %v225_v40, %v229_v41  ;;  %v232_v46 = vld [vmem:[#allocation5 + $0x410] sm:$0xff]  ;;  %v281_v38 = vld [vmem:[#allocation5 + $0x598] sm:$0xff]  ;;  %v4412_v41 = vcombine.low %v273_v29, %v277_v30 }
 0x11a   :  { %v4370_v59 = vcombine.low %v232_v46, %v236_v47 }
 0x11b   :  { %2987 = vmatmul.mubr.bf16.gmra.mrb[16].mxu0 %v5078_v49  ;;  %3326 = vmatmul.mubr.bf16.gmra.mrb[16].mxu1 %v5078_v49  ;;  %v237_v49 = vld [vmem:[#allocation5 + $0x438] sm:$0xff] }
 0x11c   :  { %3383 = vmatpush1.bf16.msra.mxu0 %v4306_v52  ;;  %3722 = vmatpush1.bf16.msra.mxu1 %v4308_v53  ;;  %v4371_v52 = vcombine.high %v232_v46, %v236_v47  ;;  %v5088_v53 = vld [vmem:[#allocation2 + $0x4] ss:$24 sps:$4 sm:$0xff]   ;;  %v4372_v60 = vcombine.low %v233_v48, %v237_v49  ;;  %v292_v46 = vld [vmem:[#allocation5 + $0x5f0] sm:$0xff] }
 0x11d   :  { %3384 = vmatprep.subr.bf16.mxu0 %v4315_v54  ;;  %3723 = vmatprep.subr.bf16.mxu1 %v4317_v55  ;;  %v4373_v54 = vcombine.high %v233_v48, %v237_v49  ;;  %v240_v55 = vld [vmem:[#allocation5 + $0x450] sm:$0xff]  ;;  %v289_v47 = vld [vmem:[#allocation5 + $0x5d8] sm:$0xff] }
 0x11e   :  { %2996 = vmatprep.mubr.bf16.mxu0 %v5079_v56  ;;  %3335 = vmatprep.mubr.bf16.mxu1 %v5079_v56  ;;  %v244_v56 = vld [vmem:[#allocation5 + $0x470] sm:$0xff]  ;;  %v293_v48 = vld [vmem:[#allocation5 + $0x5f8] sm:$0xff] }
 0x11f   :  { %v4378_v4 = vcombine.low %v240_v55, %v244_v56 }
 0x120   :  { %3385 = vmatpush1.bf16.msra.mxu0 %v4314_v61  ;;  %3724 = vmatpush1.bf16.msra.mxu1 %v4316_v62  ;;  %v4379_v61 = vcombine.high %v240_v55, %v244_v56  ;;  %v4381_v62 = vcombine.high %v241_v57, %v245_v58  ;;  %v5095_v55 = vld [vmem:[#allocation2 + $0x90] ss:$24 sps:$4 sm:$0xff]   ;;  %v297_v56 = vld [vmem:[#allocation5 + $0x618] sm:$0xff] }
 0x121   :  { %3386 = vmatprep.subr.bf16.mxu0 %v4323_v63  ;;  %3725 = vmatprep.subr.bf16.mxu1 %v4325_v0  ;;  %v248_v63 = vld [vmem:[#allocation5 + $0x490] sm:$0xff]  ;;  %v301_v57 = vld [vmem:[#allocation5 + $0x638] sm:$0xff] }
 0x122   :  { %v252_v0 = vld [vmem:[#allocation5 + $0x4b0] sm:$0xff] }
 0x123   :  { %2997 = vmatmul.mubr.bf16.gmra.mrb[20].mxu0 %v5081_v3  ;;  %3336 = vmatmul.mubr.bf16.gmra.mrb[20].mxu1 %v5081_v3  ;;  %v253_v3 = vld [vmem:[#allocation5 + $0x4b8] sm:$0xff]  ;;  %v4386_v13 = vcombine.low %v248_v63, %v252_v0 }
 0x124   :  { %3387 = vmatpush1.bf16.msra.mxu0 %v4322_v6  ;;  %3726 = vmatpush1.bf16.msra.mxu1 %v4324_v7  ;;  %v4387_v6 = vcombine.high %v248_v63, %v252_v0  ;;  %v5090_v7 = vld [vmem:[#allocation2 + $0x34] ss:$24 sps:$4 sm:$0xff]   ;;  %v4388_v14 = vcombine.low %v249_v2, %v253_v3 }
 0x125   :  { %3388 = vmatprep.subr.bf16.mxu0 %v4331_v8  ;;  %3727 = vmatprep.subr.bf16.mxu1 %v4333_v9  ;;  %v4389_v8 = vcombine.high %v249_v2, %v253_v3  ;;  %v256_v9 = vld [vmem:[#allocation5 + $0x4d0] sm:$0xff]  ;;  %v309_v2 = vld [vmem:[#allocation5 + $0x678] sm:$0xff] }
 0x126   :  { %3006 = vmatprep.mubr.bf16.mxu0 %v5082_v10  ;;  %3345 = vmatprep.mubr.bf16.mxu1 %v5082_v10  ;;  %v260_v10 = vld [vmem:[#allocation5 + $0x4f0] sm:$0xff] }
 0x127   :  { %v4394_v22 = vcombine.low %v256_v9, %v260_v10  ;;  %v304_v63 = vld [vmem:[#allocation5 + $0x650] sm:$0xff] }
 0x128   :  { %3389 = vmatpush1.bf16.msra.mxu0 %v4330_v15  ;;  %3728 = vmatpush1.bf16.msra.mxu1 %v4332_v16  ;;  %v4395_v15 = vcombine.high %v256_v9, %v260_v10  ;;  %v4397_v16 = vcombine.high %v257_v11, %v261_v12  ;;  %v308_v0 = vld [vmem:[#allocation5 + $0x670] sm:$0xff]  ;;  %v5097_v9 = vld [vmem:[#allocation2 + $0xc0] ss:$24 sps:$4 sm:$0xff]  }
 0x129   :  { %3390 = vmatprep.subr.bf16.mxu0 %v4339_v17  ;;  %3729 = vmatprep.subr.bf16.mxu1 %v4341_v18  ;;  %v264_v17 = vld [vmem:[#allocation5 + $0x510] sm:$0xff]  ;;  %v313_v10 = vld [vmem:[#allocation5 + $0x698] sm:$0xff]  ;;  %v4442_v12 = vcombine.low %v304_v63, %v308_v0 }
 0x12a   :  { %v268_v18 = vld [vmem:[#allocation5 + $0x530] sm:$0xff]  ;;  %v317_v11 = vld [vmem:[#allocation5 + $0x6b8] sm:$0xff] }
 0x12b   :  { %3007 = vmatmul.mubr.bf16.gmra.mrb[24].mxu0 %v5084_v21  ;;  %3346 = vmatmul.mubr.bf16.gmra.mrb[24].mxu1 %v5084_v21  ;;  %v269_v21 = vld [vmem:[#allocation5 + $0x538] sm:$0xff]  ;;  %v4402_v31 = vcombine.low %v264_v17, %v268_v18 }
 0x12c   :  { %3391 = vmatpush1.bf16.msra.mxu0 %v4338_v24  ;;  %3730 = vmatpush1.bf16.msra.mxu1 %v4340_v25  ;;  %v4403_v24 = vcombine.high %v264_v17, %v268_v18  ;;  %v5092_v25 = vld [vmem:[#allocation2 + $0x64] ss:$24 sps:$4 sm:$0xff]   ;;  %v4404_v32 = vcombine.low %v265_v20, %v269_v21  ;;  %v320_v17 = vld [vmem:[#allocation5 + $0x6d0] sm:$0xff] }
 0x12d   :  { %3392 = vmatprep.subr.bf16.mxu0 %v4347_v26  ;;  %3731 = vmatprep.subr.bf16.mxu1 %v4349_v27  ;;  %v4405_v26 = vcombine.high %v265_v20, %v269_v21  ;;  %v272_v27 = vld [vmem:[#allocation5 + $0x550] sm:$0xff]  ;;  %v325_v20 = vld [vmem:[#allocation5 + $0x6f8] sm:$0xff] }
 0x12e   :  { %3016 = vmatprep.mubr.bf16.mxu0 %v5085_v28  ;;  %3355 = vmatprep.mubr.bf16.mxu1 %v5085_v28  ;;  %v276_v28 = vld [vmem:[#allocation5 + $0x570] sm:$0xff] }
 0x12f   :  { %v4410_v40 = vcombine.low %v272_v27, %v276_v28  ;;  %v324_v18 = vld [vmem:[#allocation5 + $0x6f0] sm:$0xff] }
 0x130   :  { %3393 = vmatpush1.bf16.msra.mxu0 %v4346_v33  ;;  %3732 = vmatpush1.bf16.msra.mxu1 %v4348_v34  ;;  %v4411_v33 = vcombine.high %v272_v27, %v276_v28  ;;  %v4413_v34 = vcombine.high %v273_v29, %v277_v30  ;;  %v5099_v27 = vld [vmem:[#allocation2 + $0xf0] ss:$24 sps:$4 sm:$0xff]   ;;  %v329_v28 = vld [vmem:[#allocation5 + $0x718] sm:$0xff]  ;;  %v4458_v30 = vcombine.low %v320_v17, %v324_v18 }
 0x131   :  { %3394 = vmatprep.subr.bf16.mxu0 %v4355_v35  ;;  %3733 = vmatprep.subr.bf16.mxu1 %v4357_v36  ;;  %v280_v35 = vld [vmem:[#allocation5 + $0x590] sm:$0xff]  ;;  %v333_v29 = vld [vmem:[#allocation5 + $0x738] sm:$0xff] }
 0x132   :  { %v284_v36 = vld [vmem:[#allocation5 + $0x5b0] sm:$0xff] }
 0x133   :  { %3017 = vmatmul.mubr.bf16.gmra.mrb[28].mxu0 %v5087_v39  ;;  %3356 = vmatmul.mubr.bf16.gmra.mrb[28].mxu1 %v5087_v39  ;;  %v285_v39 = vld [vmem:[#allocation5 + $0x5b8] sm:$0xff]  ;;  %v4418_v49 = vcombine.low %v280_v35, %v284_v36 }
 0x134   :  { %3395 = vmatpush1.bf16.msra.mxu0 %v4354_v42  ;;  %3734 = vmatpush1.bf16.msra.mxu1 %v4356_v43  ;;  %v4419_v42 = vcombine.high %v280_v35, %v284_v36  ;;  %v5094_v43 = vld [vmem:[#allocation2 + $0x94] ss:$24 sps:$4 sm:$0xff]  }
 0x135   :  { %3396 = vmatprep.subr.bf16.mxu0 %v4363_v44  ;;  %3735 = vmatprep.subr.bf16.mxu1 %v4365_v45  ;;  %v4421_v44 = vcombine.high %v281_v38, %v285_v39  ;;  %v288_v45 = vld [vmem:[#allocation5 + $0x5d0] sm:$0xff] }
 0x136   :  { %3398 = vmatprep.mubr.bf16.mxu0 %v5088_v53  ;;  %3737 = vmatprep.mubr.bf16.mxu1 %v5088_v53  ;;  %v296_v53 = vld [vmem:[#allocation5 + $0x610] sm:$0xff]  ;;  %v4426_v58 = vcombine.low %v288_v45, %v292_v46 }
 0x137   :  { %v336_v35 = vld [vmem:[#allocation5 + $0x750] sm:$0xff] }
 0x138   :  { %3397 = vmatpush1.bf16.msra.mxu0 %v4362_v50  ;;  %3736 = vmatpush1.bf16.msra.mxu1 %v4364_v51  ;;  %v4420_v50 = vcombine.low %v281_v38, %v285_v39  ;;  %v4427_v51 = vcombine.high %v288_v45, %v292_v46  ;;  %v340_v36 = vld [vmem:[#allocation5 + $0x770] sm:$0xff]  ;;  %v341_v38 = vld [vmem:[#allocation5 + $0x778] sm:$0xff] }
 0x139   :  { %3479 = vmatprep.subr.bf16.mxu0 %v4371_v52  ;;  %3818 = vmatprep.subr.bf16.mxu1 %v4373_v54  ;;  %v4429_v52 = vcombine.high %v289_v47, %v293_v48  ;;  %v300_v54 = vld [vmem:[#allocation5 + $0x630] sm:$0xff]  ;;  %v5101_v45 = vld [vmem:[#allocation2 + $0x120] ss:$24 sps:$4 sm:$0xff]  }
 0x13a   :  { %v4434_v3 = vcombine.low %v296_v53, %v300_v54  ;;  %v345_v46 = vld [vmem:[#allocation5 + $0x798] sm:$0xff] }
 0x13b   :  { %3399 = vmatmul.mubr.bf16.vlgmr.msra.gmra.mrb[32].mxu0 %v5089_v1  ;;  %3738 = vmatmul.mubr.bf16.vlgmr.msra.gmra.mrb[32].mxu1 %v5089_v1  ;;  %v305_v1 = vld [vmem:[#allocation5 + $0x658] sm:$0xff] }
 0x13c   :  { %3480 = vmatpush1.bf16.msra.mxu0 %v4370_v59  ;;  %3819 = vmatpush1.bf16.msra.mxu1 %v4372_v60  ;;  %v4428_v59 = vcombine.low %v289_v47, %v293_v48  ;;  %v4435_v60 = vcombine.high %v296_v53, %v300_v54  ;;  %v349_v47 = vld [vmem:[#allocation5 + $0x7b8] sm:$0xff]  ;;  %v4474_v48 = vcombine.low %v336_v35, %v340_v36  ;;  %v352_v53 = vld [vmem:[#allocation5 + $0x7d0] sm:$0xff] }
 0x13d   :  { %3481 = vmatprep.subr.bf16.mxu0 %v4379_v61  ;;  %3820 = vmatprep.subr.bf16.mxu1 %v4381_v62  ;;  %v5096_v61 = vld [vmem:[#allocation2 + $0xc4] ss:$24 sps:$4 sm:$0xff]   ;;  %v4437_v62 = vcombine.high %v297_v56, %v301_v57  ;;  %v356_v54 = vld [vmem:[#allocation5 + $0x7f0] sm:$0xff] }
 0x13e   :  { %3408 = vmatprep.mubr.bf16.mxu0 %v5090_v7  ;;  %3747 = vmatprep.mubr.bf16.mxu1 %v5090_v7  ;;  %v312_v7 = vld [vmem:[#allocation5 + $0x690] sm:$0xff] }
 0x140   :  { %3482 = vmatpush1.bf16.msra.mxu0 %v4378_v4  ;;  %3821 = vmatpush1.bf16.msra.mxu1 %v4380_v5  ;;  %v4436_v4 = vcombine.low %v297_v56, %v301_v57  ;;  %v4443_v5 = vcombine.high %v304_v63, %v308_v0  ;;  %v357_v56 = vld [vmem:[#allocation5 + $0x7f8] sm:$0xff]  ;;  %v5103_v63 = vld [vmem:[#allocation2 + $0x150] ss:$24 sps:$4 sm:$0xff]  }
 0x141   :  { %3483 = vmatprep.subr.bf16.mxu0 %v4387_v6  ;;  %3822 = vmatprep.subr.bf16.mxu1 %v4389_v8  ;;  %v4445_v6 = vcombine.high %v305_v1, %v309_v2  ;;  %v316_v8 = vld [vmem:[#allocation5 + $0x6b0] sm:$0xff]  ;;  %v361_v0 = vld [vmem:[#allocation5 + $0x818] sm:$0xff] }
 0x142   :  { %v4450_v21 = vcombine.low %v312_v7, %v316_v8 }
 0x143   :  { %3409 = vmatmul.mubr.bf16.gmra.mrb[36].mxu0 %v5091_v19  ;;  %3748 = vmatmul.mubr.bf16.gmra.mrb[36].mxu1 %v5091_v19  ;;  %v321_v19 = vld [vmem:[#allocation5 + $0x6d8] sm:$0xff] }
 0x144   :  { %3484 = vmatpush1.bf16.msra.mxu0 %v4386_v13  ;;  %3823 = vmatpush1.bf16.msra.mxu1 %v4388_v14  ;;  %v4444_v13 = vcombine.low %v305_v1, %v309_v2  ;;  %v4451_v14 = vcombine.high %v312_v7, %v316_v8  ;;  %v365_v1 = vld [vmem:[#allocation5 + $0x838] sm:$0xff]  ;;  %v4490_v2 = vcombine.low %v352_v53, %v356_v54  ;;  %v368_v7 = vld [vmem:[#allocation5 + $0x850] sm:$0xff] }
 0x145   :  { %3485 = vmatprep.subr.bf16.mxu0 %v4395_v15  ;;  %3824 = vmatprep.subr.bf16.mxu1 %v4397_v16  ;;  %v5098_v15 = vld [vmem:[#allocation2 + $0xf4] ss:$24 sps:$4 sm:$0xff]   ;;  %v4453_v16 = vcombine.high %v313_v10, %v317_v11 }
 0x146   :  { %3418 = vmatprep.mubr.bf16.mxu0 %v5092_v25  ;;  %3757 = vmatprep.mubr.bf16.mxu1 %v5092_v25  ;;  %v328_v25 = vld [vmem:[#allocation5 + $0x710] sm:$0xff] }
 0x147   :  { %v372_v8 = vld [vmem:[#allocation5 + $0x870] sm:$0xff] }
 0x148   :  { %3486 = vmatpush1.bf16.msra.mxu0 %v4394_v22  ;;  %3825 = vmatpush1.bf16.msra.mxu1 %v4396_v23  ;;  %v4452_v22 = vcombine.low %v313_v10, %v317_v11  ;;  %v4459_v23 = vcombine.high %v320_v17, %v324_v18  ;;  %v373_v10 = vld [vmem:[#allocation5 + $0x878] sm:$0xff]  ;;  %v5105_v17 = vld [vmem:[#allocation2 + $0x8] ss:$24 sps:$4 sm:$0xff]  }
 0x149   :  { %3487 = vmatprep.subr.bf16.mxu0 %v4403_v24  ;;  %3826 = vmatprep.subr.bf16.mxu1 %v4405_v26  ;;  %v4461_v24 = vcombine.high %v321_v19, %v325_v20  ;;  %v332_v26 = vld [vmem:[#allocation5 + $0x730] sm:$0xff]  ;;  %v377_v18 = vld [vmem:[#allocation5 + $0x898] sm:$0xff] }
 0x14a   :  { %v4466_v39 = vcombine.low %v328_v25, %v332_v26 }
 0x14b   :  { %3419 = vmatmul.mubr.bf16.gmra.mrb[40].mxu0 %v5093_v37  ;;  %3758 = vmatmul.mubr.bf16.gmra.mrb[40].mxu1 %v5093_v37  ;;  %v337_v37 = vld [vmem:[#allocation5 + $0x758] sm:$0xff] }
 0x14c   :  { %3488 = vmatpush1.bf16.msra.mxu0 %v4402_v31  ;;  %3827 = vmatpush1.bf16.msra.mxu1 %v4404_v32  ;;  %v4460_v31 = vcombine.low %v321_v19, %v325_v20  ;;  %v4467_v32 = vcombine.high %v328_v25, %v332_v26  ;;  %v381_v19 = vld [vmem:[#allocation5 + $0x8b8] sm:$0xff]  ;;  %v4506_v20 = vcombine.low %v368_v7, %v372_v8  ;;  %v384_v25 = vld [vmem:[#allocation5 + $0x8d0] sm:$0xff] }
 0x14d   :  { %3489 = vmatprep.subr.bf16.mxu0 %v4411_v33  ;;  %3828 = vmatprep.subr.bf16.mxu1 %v4413_v34  ;;  %v5100_v33 = vld [vmem:[#allocation2 + $0x124] ss:$24 sps:$4 sm:$0xff]   ;;  %v4469_v34 = vcombine.high %v329_v28, %v333_v29  ;;  %v388_v26 = vld [vmem:[#allocation5 + $0x8f0] sm:$0xff] }
 0x14e   :  { %3428 = vmatprep.mubr.bf16.mxu0 %v5094_v43  ;;  %3767 = vmatprep.mubr.bf16.mxu1 %v5094_v43  ;;  %v344_v43 = vld [vmem:[#allocation5 + $0x790] sm:$0xff] }
 0x150   :  { %3490 = vmatpush1.bf16.msra.mxu0 %v4410_v40  ;;  %3829 = vmatpush1.bf16.msra.mxu1 %v4412_v41  ;;  %v4468_v40 = vcombine.low %v329_v28, %v333_v29  ;;  %v4475_v41 = vcombine.high %v336_v35, %v340_v36  ;;  %v389_v28 = vld [vmem:[#allocation5 + $0x8f8] sm:$0xff] }
 0x151   :  { %3491 = vmatprep.subr.bf16.mxu0 %v4419_v42  ;;  %3830 = vmatprep.subr.bf16.mxu1 %v4421_v44  ;;  %v4477_v42 = vcombine.high %v337_v37, %v341_v38  ;;  %v348_v44 = vld [vmem:[#allocation5 + $0x7b0] sm:$0xff]  ;;  %v393_v36 = vld [vmem:[#allocation5 + $0x918] sm:$0xff] }
 0x152   :  { %v4482_v57 = vcombine.low %v344_v43, %v348_v44  ;;  %v5107_v35 = vld [vmem:[#allocation2 + $0x38] ss:$24 sps:$4 sm:$0xff]  }
 0x153   :  { %3429 = vmatmul.mubr.bf16.gmra.mrb[44].mxu0 %v5095_v55  ;;  %3768 = vmatmul.mubr.bf16.gmra.mrb[44].mxu1 %v5095_v55  ;;  %v353_v55 = vld [vmem:[#allocation5 + $0x7d8] sm:$0xff] }
 0x154   :  { %3492 = vmatpush1.bf16.msra.mxu0 %v4418_v49  ;;  %3831 = vmatpush1.bf16.msra.mxu1 %v4420_v50  ;;  %v4476_v49 = vcombine.low %v337_v37, %v341_v38  ;;  %v4483_v50 = vcombine.high %v344_v43, %v348_v44  ;;  %v397_v37 = vld [vmem:[#allocation5 + $0x938] sm:$0xff]  ;;  %v4522_v38 = vcombine.low %v384_v25, %v388_v26  ;;  %v400_v43 = vld [vmem:[#allocation5 + $0x950] sm:$0xff] }
 0x155   :  { %3493 = vmatprep.subr.bf16.mxu0 %v4427_v51  ;;  %3832 = vmatprep.subr.bf16.mxu1 %v4429_v52  ;;  %v5102_v51 = vld [vmem:[#allocation2 + $0x154] ss:$24 sps:$4 sm:$0xff]   ;;  %v4485_v52 = vcombine.high %v345_v46, %v349_v47 }
 0x156   :  { %3438 = vmatprep.mubr.bf16.mxu0 %v5096_v61  ;;  %3777 = vmatprep.mubr.bf16.mxu1 %v5096_v61  ;;  %v360_v61 = vld [vmem:[#allocation5 + $0x810] sm:$0xff] }
 0x157   :  { %v404_v44 = vld [vmem:[#allocation5 + $0x970] sm:$0xff] }
 0x158   :  { %3494 = vmatpush1.bf16.msra.mxu0 %v4426_v58  ;;  %3833 = vmatpush1.bf16.msra.mxu1 %v4428_v59  ;;  %v4484_v58 = vcombine.low %v345_v46, %v349_v47  ;;  %v4491_v59 = vcombine.high %v352_v53, %v356_v54  ;;  %v405_v46 = vld [vmem:[#allocation5 + $0x978] sm:$0xff]  ;;  %v5109_v53 = vld [vmem:[#allocation2 + $0x68] ss:$24 sps:$4 sm:$0xff]  }
 0x159   :  { %3495 = vmatprep.subr.bf16.mxu0 %v4435_v60  ;;  %3834 = vmatprep.subr.bf16.mxu1 %v4437_v62  ;;  %v4493_v60 = vcombine.high %v353_v55, %v357_v56  ;;  %v364_v62 = vld [vmem:[#allocation5 + $0x830] sm:$0xff]  ;;  %v409_v54 = vld [vmem:[#allocation5 + $0x998] sm:$0xff] }
 0x15a   :  { %v4498_v11 = vcombine.low %v360_v61, %v364_v62 }
 0x15b   :  { %3439 = vmatmul.mubr.bf16.gmra.mrb[48].mxu0 %v5097_v9  ;;  %3778 = vmatmul.mubr.bf16.gmra.mrb[48].mxu1 %v5097_v9  ;;  %v369_v9 = vld [vmem:[#allocation5 + $0x858] sm:$0xff] }
 0x15c   :  { %3496 = vmatpush1.bf16.msra.mxu0 %v4434_v3  ;;  %3835 = vmatpush1.bf16.msra.mxu1 %v4436_v4  ;;  %v4492_v3 = vcombine.low %v353_v55, %v357_v56  ;;  %v4499_v4 = vcombine.high %v360_v61, %v364_v62  ;;  %v413_v55 = vld [vmem:[#allocation5 + $0x9b8] sm:$0xff]  ;;  %v4538_v56 = vcombine.low %v400_v43, %v404_v44  ;;  %v416_v61 = vld [vmem:[#allocation5 + $0x9d0] sm:$0xff] }
 0x15d   :  { %3497 = vmatprep.subr.bf16.mxu0 %v4443_v5  ;;  %3836 = vmatprep.subr.bf16.mxu1 %v4445_v6  ;;  %v5104_v5 = vld [vmem:[#allocation2 + $0xc] ss:$24 sps:$4 sm:$0xff]   ;;  %v4501_v6 = vcombine.high %v361_v0, %v365_v1  ;;  %v420_v62 = vld [vmem:[#allocation5 + $0x9f0] sm:$0xff] }
 0x15e   :  { %3448 = vmatprep.mubr.bf16.mxu0 %v5098_v15  ;;  %3787 = vmatprep.mubr.bf16.mxu1 %v5098_v15  ;;  %v376_v15 = vld [vmem:[#allocation5 + $0x890] sm:$0xff] }
 0x160   :  { %3498 = vmatpush1.bf16.msra.mxu0 %v4442_v12  ;;  %3837 = vmatpush1.bf16.msra.mxu1 %v4444_v13  ;;  %v4500_v12 = vcombine.low %v361_v0, %v365_v1  ;;  %v4507_v13 = vcombine.high %v368_v7, %v372_v8  ;;  %v421_v0 = vld [vmem:[#allocation5 + $0x9f8] sm:$0xff] }
 0x161   :  { %3499 = vmatprep.subr.bf16.mxu0 %v4451_v14  ;;  %3838 = vmatprep.subr.bf16.mxu1 %v4453_v16  ;;  %v4509_v14 = vcombine.high %v369_v9, %v373_v10  ;;  %v380_v16 = vld [vmem:[#allocation5 + $0x8b0] sm:$0xff]  ;;  %v425_v8 = vld [vmem:[#allocation5 + $0xa18] sm:$0xff] }
 0x162   :  { %v4514_v29 = vcombine.low %v376_v15, %v380_v16  ;;  %v5111_v7 = vld [vmem:[#allocation2 + $0x98] ss:$24 sps:$4 sm:$0xff]  }
 0x163   :  { %3449 = vmatmul.mubr.bf16.gmra.mrb[52].mxu0 %v5099_v27  ;;  %3788 = vmatmul.mubr.bf16.gmra.mrb[52].mxu1 %v5099_v27  ;;  %v385_v27 = vld [vmem:[#allocation5 + $0x8d8] sm:$0xff] }
 0x164   :  { %3500 = vmatpush1.bf16.msra.mxu0 %v4450_v21  ;;  %3839 = vmatpush1.bf16.msra.mxu1 %v4452_v22  ;;  %v4508_v21 = vcombine.low %v369_v9, %v373_v10  ;;  %v4515_v22 = vcombine.high %v376_v15, %v380_v16  ;;  %v429_v9 = vld [vmem:[#allocation5 + $0xa38] sm:$0xff]  ;;  %v4554_v10 = vcombine.low %v416_v61, %v420_v62  ;;  %v432_v15 = vld [vmem:[#allocation5 + $0xa50] sm:$0xff] }
 0x165   :  { %3501 = vmatprep.subr.bf16.mxu0 %v4459_v23  ;;  %3840 = vmatprep.subr.bf16.mxu1 %v4461_v24  ;;  %v5106_v23 = vld [vmem:[#allocation2 + $0x3c] ss:$24 sps:$4 sm:$0xff]   ;;  %v4517_v24 = vcombine.high %v377_v18, %v381_v19 }
 0x166   :  { %3458 = vmatprep.mubr.bf16.mxu0 %v5100_v33  ;;  %3797 = vmatprep.mubr.bf16.mxu1 %v5100_v33  ;;  %v392_v33 = vld [vmem:[#allocation5 + $0x910] sm:$0xff] }
 0x167   :  { %v436_v16 = vld [vmem:[#allocation5 + $0xa70] sm:$0xff] }
 0x168   :  { %3502 = vmatpush1.bf16.msra.mxu0 %v4458_v30  ;;  %3841 = vmatpush1.bf16.msra.mxu1 %v4460_v31  ;;  %v4516_v30 = vcombine.low %v377_v18, %v381_v19  ;;  %v4523_v31 = vcombine.high %v384_v25, %v388_v26  ;;  %v437_v18 = vld [vmem:[#allocation5 + $0xa78] sm:$0xff]  ;;  %v5113_v25 = vld [vmem:[#allocation2 + $0xc8] ss:$24 sps:$4 sm:$0xff]  }
 0x169   :  { %3503 = vmatprep.subr.bf16.mxu0 %v4467_v32  ;;  %3842 = vmatprep.subr.bf16.mxu1 %v4469_v34  ;;  %v4525_v32 = vcombine.high %v385_v27, %v389_v28  ;;  %v396_v34 = vld [vmem:[#allocation5 + $0x930] sm:$0xff]  ;;  %v441_v26 = vld [vmem:[#allocation5 + $0xa98] sm:$0xff] }
 0x16a   :  { %v4530_v47 = vcombine.low %v392_v33, %v396_v34 }
 0x16b   :  { %3459 = vmatmul.mubr.bf16.gmra.mrb[56].mxu0 %v5101_v45  ;;  %3798 = vmatmul.mubr.bf16.gmra.mrb[56].mxu1 %v5101_v45  ;;  %v401_v45 = vld [vmem:[#allocation5 + $0x958] sm:$0xff] }
 0x16c   :  { %3504 = vmatpush1.bf16.msra.mxu0 %v4466_v39  ;;  %3843 = vmatpush1.bf16.msra.mxu1 %v4468_v40  ;;  %v4524_v39 = vcombine.low %v385_v27, %v389_v28  ;;  %v4531_v40 = vcombine.high %v392_v33, %v396_v34  ;;  %v445_v27 = vld [vmem:[#allocation5 + $0xab8] sm:$0xff]  ;;  %v4570_v28 = vcombine.low %v432_v15, %v436_v16  ;;  %v448_v33 = vld [vmem:[#allocation5 + $0xad0] sm:$0xff] }
 0x16d   :  { %3505 = vmatprep.subr.bf16.mxu0 %v4475_v41  ;;  %3844 = vmatprep.subr.bf16.mxu1 %v4477_v42  ;;  %v5108_v41 = vld [vmem:[#allocation2 + $0x6c] ss:$24 sps:$4 sm:$0xff]   ;;  %v4533_v42 = vcombine.high %v393_v36, %v397_v37  ;;  %v452_v34 = vld [vmem:[#allocation5 + $0xaf0] sm:$0xff] }
 0x16e   :  { %3468 = vmatprep.mubr.bf16.mxu0 %v5102_v51  ;;  %3807 = vmatprep.mubr.bf16.mxu1 %v5102_v51  ;;  %v408_v51 = vld [vmem:[#allocation5 + $0x990] sm:$0xff] }
 0x170   :  { %3506 = vmatpush1.bf16.msra.mxu0 %v4474_v48  ;;  %3845 = vmatpush1.bf16.msra.mxu1 %v4476_v49  ;;  %v4532_v48 = vcombine.low %v393_v36, %v397_v37  ;;  %v4539_v49 = vcombine.high %v400_v43, %v404_v44  ;;  %v453_v36 = vld [vmem:[#allocation5 + $0xaf8] sm:$0xff] }
 0x171   :  { %3507 = vmatprep.subr.bf16.mxu0 %v4483_v50  ;;  %3846 = vmatprep.subr.bf16.mxu1 %v4485_v52  ;;  %v4541_v50 = vcombine.high %v401_v45, %v405_v46  ;;  %v412_v52 = vld [vmem:[#allocation5 + $0x9b0] sm:$0xff]  ;;  %v457_v44 = vld [vmem:[#allocation5 + $0xb18] sm:$0xff] }
 0x172   :  { %v4546_v1 = vcombine.low %v408_v51, %v412_v52  ;;  %v5115_v43 = vld [vmem:[#allocation2 + $0xf8] ss:$24 sps:$4 sm:$0xff]  }
 0x173   :  { %3469 = vmatmul.mubr.bf16.gmra.mrb[60].mxu0 %v5103_v63  ;;  %3808 = vmatmul.mubr.bf16.gmra.mrb[60].mxu1 %v5103_v63  ;;  %v417_v63 = vld [vmem:[#allocation5 + $0x9d8] sm:$0xff] }
 0x174   :  { %3508 = vmatpush1.bf16.msra.mxu0 %v4482_v57  ;;  %3847 = vmatpush1.bf16.msra.mxu1 %v4484_v58  ;;  %v4540_v57 = vcombine.low %v401_v45, %v405_v46  ;;  %v4547_v58 = vcombine.high %v408_v51, %v412_v52  ;;  %v461_v45 = vld [vmem:[#allocation5 + $0xb38] sm:$0xff]  ;;  %v4586_v46 = vcombine.low %v448_v33, %v452_v34  ;;  %v464_v51 = vld [vmem:[#allocation5 + $0xb50] sm:$0xff] }
 0x175   :  { %3509 = vmatprep.subr.bf16.mxu0 %v4491_v59  ;;  %3848 = vmatprep.subr.bf16.mxu1 %v4493_v60  ;;  %v5110_v59 = vld [vmem:[#allocation2 + $0x9c] ss:$24 sps:$4 sm:$0xff]   ;;  %v4549_v60 = vcombine.high %v409_v54, %v413_v55 }
 0x176   :  { %3511 = vmatprep.mubr.bf16.mxu0 %v5104_v5  ;;  %3850 = vmatprep.mubr.bf16.mxu1 %v5104_v5  ;;  %v424_v5 = vld [vmem:[#allocation5 + $0xa10] sm:$0xff] }
 0x177   :  { %v468_v52 = vld [vmem:[#allocation5 + $0xb70] sm:$0xff] }
 0x178   :  { %3510 = vmatpush1.bf16.msra.mxu0 %v4490_v2  ;;  %3849 = vmatpush1.bf16.msra.mxu1 %v4492_v3  ;;  %v4548_v2 = vcombine.low %v409_v54, %v413_v55  ;;  %v4555_v3 = vcombine.high %v416_v61, %v420_v62  ;;  %v469_v54 = vld [vmem:[#allocation5 + $0xb78] sm:$0xff]  ;;  %v5117_v61 = vld [vmem:[#allocation2 + $0x128] ss:$24 sps:$4 sm:$0xff]  }
 0x179   :  { %3592 = vmatprep.subr.bf16.mxu0 %v4499_v4  ;;  %3931 = vmatprep.subr.bf16.mxu1 %v4501_v6  ;;  %v4557_v4 = vcombine.high %v417_v63, %v421_v0  ;;  %v428_v6 = vld [vmem:[#allocation5 + $0xa30] sm:$0xff]  ;;  %v473_v62 = vld [vmem:[#allocation5 + $0xb98] sm:$0xff] }
 0x17a   :  { %v4562_v19 = vcombine.low %v424_v5, %v428_v6 }
 0x17b   :  { %3512 = vmatmul.mubr.bf16.vlgmr.msra.gmra.mrb[32].mxu0 %v5105_v17  ;;  %3851 = vmatmul.mubr.bf16.vlgmr.msra.gmra.mrb[32].mxu1 %v5105_v17  ;;  %v433_v17 = vld [vmem:[#allocation5 + $0xa58] sm:$0xff] }
 0x17c   :  { %3593 = vmatpush1.bf16.msra.mxu0 %v4498_v11  ;;  %3932 = vmatpush1.bf16.msra.mxu1 %v4500_v12  ;;  %v4556_v11 = vcombine.low %v417_v63, %v421_v0  ;;  %v4563_v12 = vcombine.high %v424_v5, %v428_v6  ;;  %v477_v63 = vld [vmem:[#allocation5 + $0xbb8] sm:$0xff]  ;;  %v4602_v0 = vcombine.low %v464_v51, %v468_v52  ;;  %v480_v5 = vld [vmem:[#allocation5 + $0xbd0] sm:$0xff] }
 0x17d   :  { %3594 = vmatprep.subr.bf16.mxu0 %v4507_v13  ;;  %3933 = vmatprep.subr.bf16.mxu1 %v4509_v14  ;;  %v5112_v13 = vld [vmem:[#allocation2 + $0xcc] ss:$24 sps:$4 sm:$0xff]   ;;  %v4565_v14 = vcombine.high %v425_v8, %v429_v9  ;;  %v484_v6 = vld [vmem:[#allocation5 + $0xbf0] sm:$0xff] }
 0x17e   :  { %3521 = vmatprep.mubr.bf16.mxu0 %v5106_v23  ;;  %3860 = vmatprep.mubr.bf16.mxu1 %v5106_v23  ;;  %v440_v23 = vld [vmem:[#allocation5 + $0xa90] sm:$0xff] }
 0x180   :  { %3595 = vmatpush1.bf16.msra.mxu0 %v4506_v20  ;;  %3934 = vmatpush1.bf16.msra.mxu1 %v4508_v21  ;;  %v4564_v20 = vcombine.low %v425_v8, %v429_v9  ;;  %v4571_v21 = vcombine.high %v432_v15, %v436_v16  ;;  %v485_v8 = vld [vmem:[#allocation5 + $0xbf8] sm:$0xff]  ;;  %v5120_v16 = vld [vmem:[#allocation2 + $0x14] ss:$24 sps:$4 sm:$0xff]  }
 0x181   :  { %3596 = vmatprep.subr.bf16.mxu0 %v4515_v22  ;;  %3935 = vmatprep.subr.bf16.mxu1 %v4517_v24  ;;  %v4573_v22 = vcombine.high %v433_v17, %v437_v18  ;;  %v444_v24 = vld [vmem:[#allocation5 + $0xab0] sm:$0xff] }
 0x182   :  { %v4578_v37 = vcombine.low %v440_v23, %v444_v24 }
 0x183   :  { %3522 = vmatmul.mubr.bf16.gmra.mrb[36].mxu0 %v5107_v35  ;;  %3861 = vmatmul.mubr.bf16.gmra.mrb[36].mxu1 %v5107_v35  ;;  %v449_v35 = vld [vmem:[#allocation5 + $0xad8] sm:$0xff] }
 0x184   :  { %3597 = vmatpush1.bf16.msra.mxu0 %v4514_v29  ;;  %3936 = vmatpush1.bf16.msra.mxu1 %v4516_v30  ;;  %v4572_v29 = vcombine.low %v433_v17, %v437_v18  ;;  %v4579_v30 = vcombine.high %v440_v23, %v444_v24  ;;  %v5121_v17 = vld [vmem:[#allocation2 + $0x10] ss:$24 sps:$4 sm:$0xff]   ;;  %v5122_v18 = vld [vmem:[#allocation2 + $0x44] ss:$24 sps:$4 sm:$0xff]  }
 0x185   :  { %3598 = vmatprep.subr.bf16.mxu0 %v4523_v31  ;;  %3937 = vmatprep.subr.bf16.mxu1 %v4525_v32  ;;  %v5114_v31 = vld [vmem:[#allocation2 + $0xfc] ss:$24 sps:$4 sm:$0xff]   ;;  %v4581_v32 = vcombine.high %v441_v26, %v445_v27  ;;  %v5299_v24 = vld [vmem:[#allocation7] sm:$0xff] }
 0x186   :  { %3531 = vmatprep.mubr.bf16.mxu0 %v5108_v41  ;;  %3870 = vmatprep.mubr.bf16.mxu1 %v5108_v41  ;;  %v456_v41 = vld [vmem:[#allocation5 + $0xb10] sm:$0xff] }
 0x188   :  { %3599 = vmatpush1.bf16.msra.mxu0 %v4522_v38  ;;  %3938 = vmatpush1.bf16.msra.mxu1 %v4524_v39  ;;  %v4580_v38 = vcombine.low %v441_v26, %v445_v27  ;;  %v4587_v39 = vcombine.high %v448_v33, %v452_v34 }
 0x189   :  { %3600 = vmatprep.subr.bf16.mxu0 %v4531_v40  ;;  %3939 = vmatprep.subr.bf16.mxu1 %v4533_v42  ;;  %v4589_v40 = vcombine.high %v449_v35, %v453_v36  ;;  %v460_v42 = vld [vmem:[#allocation5 + $0xb30] sm:$0xff] }
 0x18a   :  { %v4594_v55 = vcombine.low %v456_v41, %v460_v42 }
 0x18b   :  { %3532 = vmatmul.mubr.bf16.gmra.mrb[40].mxu0 %v5109_v53  ;;  %3871 = vmatmul.mubr.bf16.gmra.mrb[40].mxu1 %v5109_v53  ;;  %v465_v53 = vld [vmem:[#allocation5 + $0xb58] sm:$0xff] }
 0x18c   :  { %3601 = vmatpush1.bf16.msra.mxu0 %v4530_v47  ;;  %3940 = vmatpush1.bf16.msra.mxu1 %v4532_v48  ;;  %v4588_v47 = vcombine.low %v449_v35, %v453_v36  ;;  %v4595_v48 = vcombine.high %v456_v41, %v460_v42 }
 0x18d   :  { %3602 = vmatprep.subr.bf16.mxu0 %v4539_v49  ;;  %3941 = vmatprep.subr.bf16.mxu1 %v4541_v50  ;;  %v5116_v49 = vld [vmem:[#allocation2 + $0x12c] ss:$24 sps:$4 sm:$0xff]   ;;  %v4597_v50 = vcombine.high %v457_v44, %v461_v45 }
 0x18e   :  { %3541 = vmatprep.mubr.bf16.mxu0 %v5110_v59  ;;  %3880 = vmatprep.mubr.bf16.mxu1 %v5110_v59  ;;  %v472_v59 = vld [vmem:[#allocation5 + $0xb90] sm:$0xff] }
 0x190   :  { %3603 = vmatpush1.bf16.msra.mxu0 %v4538_v56  ;;  %3942 = vmatpush1.bf16.msra.mxu1 %v4540_v57  ;;  %v4596_v56 = vcombine.low %v457_v44, %v461_v45  ;;  %v4603_v57 = vcombine.high %v464_v51, %v468_v52  ;;  %v5128_v51 = vld [vmem:[#allocation2 + $0xd4] ss:$24 sps:$4 sm:$0xff]  }
 0x191   :  { %3604 = vmatprep.subr.bf16.mxu0 %v4547_v58  ;;  %3943 = vmatprep.subr.bf16.mxu1 %v4549_v60  ;;  %v4605_v58 = vcombine.high %v465_v53, %v469_v54  ;;  %v476_v60 = vld [vmem:[#allocation5 + $0xbb0] sm:$0xff] }
 0x192   :  { %v4610_v9 = vcombine.low %v472_v59, %v476_v60 }
 0x193   :  { %3542 = vmatmul.mubr.bf16.gmra.mrb[44].mxu0 %v5111_v7  ;;  %3881 = vmatmul.mubr.bf16.gmra.mrb[44].mxu1 %v5111_v7  ;;  %v481_v7 = vld [vmem:[#allocation5 + $0xbd8] sm:$0xff] }
 0x194   :  { %3605 = vmatpush1.bf16.msra.mxu0 %v4546_v1  ;;  %3944 = vmatpush1.bf16.msra.mxu1 %v4548_v2  ;;  %v4604_v1 = vcombine.low %v465_v53, %v469_v54  ;;  %v4611_v2 = vcombine.high %v472_v59, %v476_v60  ;;  %v4620_v15 = vcombine.low %v481_v7, %v485_v8 }
 0x195   :  { %3606 = vmatprep.subr.bf16.mxu0 %v4555_v3  ;;  %3945 = vmatprep.subr.bf16.mxu1 %v4557_v4  ;;  %v5118_v3 = vld [vmem:[#allocation2 + $0x15c] ss:$24 sps:$4 sm:$0xff]   ;;  %v4613_v4 = vcombine.high %v473_v62, %v477_v63 }
 0x196   :  { %3551 = vmatprep.mubr.bf16.mxu0 %v5112_v13  ;;  %3890 = vmatprep.mubr.bf16.mxu1 %v5112_v13  ;;  %v5119_v13 = vld [vmem:[#allocation2 + $0x158] ss:$24 sps:$4 sm:$0xff]  }
 0x198   :  { %3607 = vmatpush1.bf16.msra.mxu0 %v4554_v10  ;;  %3946 = vmatpush1.bf16.msra.mxu1 %v4556_v11  ;;  %v4612_v10 = vcombine.low %v473_v62, %v477_v63  ;;  %v4619_v11 = vcombine.high %v480_v5, %v484_v6 }
 0x199   :  { %3608 = vmatprep.subr.bf16.mxu0 %v4563_v12  ;;  %3947 = vmatprep.subr.bf16.mxu1 %v4565_v14  ;;  %v4621_v12 = vcombine.high %v481_v7, %v485_v8  ;;  %v4618_v14 = vcombine.low %v480_v5, %v484_v6  ;;  %v5130_v5 = vld [vmem:[#allocation2 + $0x104] ss:$24 sps:$4 sm:$0xff]  }
 0x19b   :  { %3552 = vmatmul.mubr.bf16.gmra.mrb[48].mxu0 %v5113_v25  ;;  %3891 = vmatmul.mubr.bf16.gmra.mrb[48].mxu1 %v5113_v25 }
 0x19c   :  { %3609 = vmatpush1.bf16.msra.mxu0 %v4562_v19  ;;  %3948 = vmatpush1.bf16.msra.mxu1 %v4564_v20  ;;  %v488_v19 = vlaneseq  ;;  %v5123_v20 = vld [vmem:[#allocation2 + $0x40] ss:$24 sps:$4 sm:$0xff]  }
 0x19d   :  { %3610 = vmatprep.subr.bf16.mxu0 %v4571_v21  ;;  %3949 = vmatprep.subr.bf16.mxu1 %v4573_v22  ;;  %v5124_v22 = vld [vmem:[#allocation2 + $0x74] ss:$24 sps:$4 sm:$0xff]  }
 0x19e   :  { %3561 = vmatprep.mubr.bf16.mxu0 %v5114_v31  ;;  %3900 = vmatprep.mubr.bf16.mxu1 %v5114_v31  ;;  %v5296_v21 = vshrl.u32 %v488_v19, 7 }
 0x1a0   :  { %3611 = vmatpush1.bf16.msra.mxu0 %v4570_v28  ;;  %3950 = vmatpush1.bf16.msra.mxu1 %v4572_v29  ;;  %v490_v23 = vsub.s32 0, %v5296_v21  ;;  %v498_v25 = vsub.s32 2, %v5296_v21  ;;  %v494_v26 = vsub.s32 1, %v5296_v21  ;;  %v502_v27 = vsub.s32 3, %v5296_v21  ;;  %v5125_v28 = vld [vmem:[#allocation2 + $0x70] ss:$24 sps:$4 sm:$0xff]  }
 0x1a1   :  { %3612 = vmatprep.subr.bf16.mxu0 %v4579_v30  ;;  %3951 = vmatprep.subr.bf16.mxu1 %v4581_v32  ;;  %v5126_v32 = vld [vmem:[#allocation2 + $0xa4] ss:$24 sps:$4 sm:$0xff]  }
 0x1a2   :  { %v5305_v29 = vrot.slane %v5299_v24, %v490_v23  ;;  %v5308_v30 = vrot.slane %v5299_v24, %v498_v25  ;;  %v5311_v31 = vrot.slane %v5299_v24, %v494_v26  ;;  %v5314_v33 = vrot.slane %v5299_v24, %v502_v27  ;;  %v5131_v23 = vld [vmem:[#allocation2 + $0x100] ss:$24 sps:$4 sm:$0xff]   ;;  %v5132_v25 = vld [vmem:[#allocation2 + $0x134] ss:$24 sps:$4 sm:$0xff]  }
 0x1a3   :  { %3562 = vmatmul.mubr.bf16.gmra.mrb[52].mxu0 %v5115_v43  ;;  %3901 = vmatmul.mubr.bf16.gmra.mrb[52].mxu1 %v5115_v43 }
 0x1a4   :  { %3613 = vmatpush1.bf16.msra.mxu0 %v4578_v37  ;;  %3952 = vmatpush1.bf16.msra.mxu1 %v4580_v38 }
 0x1a5   :  { %3614 = vmatprep.subr.bf16.mxu0 %v4587_v39  ;;  %3953 = vmatprep.subr.bf16.mxu1 %v4589_v40 }
 0x1a6   :  { %3571 = vmatprep.mubr.bf16.mxu0 %v5116_v49  ;;  %3910 = vmatprep.mubr.bf16.mxu1 %v5116_v49 }
 0x1a8   :  { %3615 = vmatpush1.bf16.msra.mxu0 %v4586_v46  ;;  %3954 = vmatpush1.bf16.msra.mxu1 %v4588_v47 }
 0x1a9   :  { %3616 = vmatprep.subr.bf16.mxu0 %v4595_v48  ;;  %3955 = vmatprep.subr.bf16.mxu1 %v4597_v50  ;;  %v5127_v50 = vld [vmem:[#allocation2 + $0xa0] ss:$24 sps:$4 sm:$0xff]  }
 0x1ab   :  { %3572 = vmatmul.mubr.bf16.gmra.mrb[56].mxu0 %v5117_v61  ;;  %3911 = vmatmul.mubr.bf16.gmra.mrb[56].mxu1 %v5117_v61 }
 0x1ac   :  { %3617 = vmatpush1.bf16.msra.mxu0 %v4594_v55  ;;  %3956 = vmatpush1.bf16.msra.mxu1 %v4596_v56 }
 0x1ad   :  { %3618 = vmatprep.subr.bf16.mxu0 %v4603_v57  ;;  %3957 = vmatprep.subr.bf16.mxu1 %v4605_v58 }
 0x1ae   :  { %3581 = vmatprep.mubr.bf16.mxu0 %v5118_v3  ;;  %3920 = vmatprep.mubr.bf16.mxu1 %v5118_v3 }
 0x1b0   :  { %3619 = vmatpush1.bf16.msra.mxu0 %v4602_v0  ;;  %3958 = vmatpush1.bf16.msra.mxu1 %v4604_v1 }
 0x1b1   :  { %3620 = vmatprep.subr.bf16.mxu0 %v4611_v2  ;;  %3959 = vmatprep.subr.bf16.mxu1 %v4613_v4  ;;  %v5129_v4 = vld [vmem:[#allocation2 + $0xd0] ss:$24 sps:$4 sm:$0xff]  }
 0x1b3   :  { %3582 = vmatmul.mubr.bf16.gmra.mrb[60].mxu0 %v5119_v13  ;;  %3921 = vmatmul.mubr.bf16.gmra.mrb[60].mxu1 %v5119_v13 }
 0x1b4   :  { %3621 = vmatpush1.bf16.msra.mxu0 %v4610_v9  ;;  %3960 = vmatpush1.bf16.msra.mxu1 %v4612_v10 }
 0x1b5   :  { %3622 = vmatprep.subr.bf16.mxu0 %v4619_v11  ;;  %3961 = vmatprep.subr.bf16.mxu1 %v4621_v12 }
 0x1b6   :  { %3624 = vmatprep.mubr.bf16.mxu0 %v5120_v16  ;;  %3963 = vmatprep.mubr.bf16.mxu1 %v5120_v16 }
 0x1b8   :  { %3623 = vmatpush1.bf16.msra.mxu0 %v4618_v14  ;;  %3962 = vmatpush1.bf16.msra.mxu1 %v4620_v15 }
 0x1bb   :  { %3625 = vmatmul.mubr.bf16.vlgmr.msra.gmra.mrb[32].mxu0 %v5121_v17  ;;  %3964 = vmatmul.mubr.bf16.vlgmr.msra.gmra.mrb[32].mxu1 %v5121_v17 }
 0x1bc   :  { %3634 = vmatprep.mubr.bf16.mxu0 %v5122_v18  ;;  %3973 = vmatprep.mubr.bf16.mxu1 %v5122_v18 }
 0x1c3   :  { %3635 = vmatmul.mubr.bf16.gmra.mrb[36].mxu0 %v5123_v20  ;;  %3974 = vmatmul.mubr.bf16.gmra.mrb[36].mxu1 %v5123_v20 }
 0x1c4   :  { %3644 = vmatprep.mubr.bf16.mxu0 %v5124_v22  ;;  %3983 = vmatprep.mubr.bf16.mxu1 %v5124_v22 }
 0x1cb   :  { %3645 = vmatmul.mubr.bf16.gmra.mrb[40].mxu0 %v5125_v28  ;;  %3984 = vmatmul.mubr.bf16.gmra.mrb[40].mxu1 %v5125_v28 }
 0x1cc   :  { %3654 = vmatprep.mubr.bf16.mxu0 %v5126_v32  ;;  %3993 = vmatprep.mubr.bf16.mxu1 %v5126_v32 }
 0x1ce   :  { %v2948_v34 = vpop.f32.mrb[0].mxu0  ;;  %v3287_v36 = vpop.f32.mrb[0].mxu1 }
 0x1cf   :  { %v4622_v35 = vadd.f32 %v2948_v34, %v5305_v29  ;;  %v2950_v37 = vpop.f32.mrb[1].mxu0  ;;  %v4654_v38 = vadd.f32 %v3287_v36, %v5308_v30  ;;  %v3289_v40 = vpop.f32.mrb[1].mxu1 }
 0x1d0   :  { %v4623_v39 = vadd.f32 %v2950_v37, %v5311_v31  ;;  %v2952_v41 = vpop.f32.mrb[2].mxu0  ;;  %v4655_v42 = vadd.f32 %v3289_v40, %v5314_v33  ;;  %v3291_v44 = vpop.f32.mrb[2].mxu1 }
 0x1d1   :  { %4044 = vst [vmem:[#allocation8] sm:$0xff] %v4622_v35  ;;  %v4624_v43 = vadd.f32 %v2952_v41, %v5305_v29  ;;  %v2954_v45 = vpop.f32.mrb[3].mxu0  ;;  %4046 = vst [vmem:[#allocation8 + $0x10] sm:$0xff] %v4654_v38  ;;  %v4656_v46 = vadd.f32 %v3291_v44, %v5308_v30  ;;  %v3293_v48 = vpop.f32.mrb[3].mxu1 }
 0x1d2   :  { %4045 = vst [vmem:[#allocation8 + $0x8] sm:$0xff] %v4623_v39  ;;  %v4625_v47 = vadd.f32 %v2954_v45, %v5311_v31  ;;  %4047 = vst [vmem:[#allocation8 + $0x18] sm:$0xff] %v4655_v42  ;;  %v4657_v49 = vadd.f32 %v3293_v48, %v5314_v33 }
 0x1d3   :  { %4052 = vst [vmem:[#allocation8 + $0x40] sm:$0xff] %v4624_v43  ;;  %3655 = vmatmul.mubr.bf16.gmra.mrb[44].mxu0 %v5127_v50  ;;  %4054 = vst [vmem:[#allocation8 + $0x50] sm:$0xff] %v4656_v46  ;;  %3994 = vmatmul.mubr.bf16.gmra.mrb[44].mxu1 %v5127_v50  ;;  %v5133_v46 = vld [vmem:[#allocation2 + $0x130] ss:$24 sps:$4 sm:$0xff]  }
 0x1d4   :  { %4053 = vst [vmem:[#allocation8 + $0x48] sm:$0xff] %v4625_v47  ;;  %3664 = vmatprep.mubr.bf16.mxu0 %v5128_v51  ;;  %4055 = vst [vmem:[#allocation8 + $0x58] sm:$0xff] %v4657_v49  ;;  %4003 = vmatprep.mubr.bf16.mxu1 %v5128_v51  ;;  %v5134_v47 = vld [vmem:[#allocation2 + $0x164] ss:$24 sps:$4 sm:$0xff]  }
 0x1d6   :  { %v2958_v52 = vpop.f32.mrb[4].mxu0  ;;  %v3297_v54 = vpop.f32.mrb[4].mxu1 }
 0x1d7   :  { %v4626_v53 = vadd.f32 %v2958_v52, %v5305_v29  ;;  %v2960_v55 = vpop.f32.mrb[5].mxu0  ;;  %v4658_v56 = vadd.f32 %v3297_v54, %v5308_v30  ;;  %v3299_v58 = vpop.f32.mrb[5].mxu1 }
 0x1d8   :  { %v4627_v57 = vadd.f32 %v2960_v55, %v5311_v31  ;;  %v2962_v59 = vpop.f32.mrb[6].mxu0  ;;  %v4659_v60 = vadd.f32 %v3299_v58, %v5314_v33  ;;  %v3301_v62 = vpop.f32.mrb[6].mxu1 }
 0x1d9   :  { %4060 = vst [vmem:[#allocation8 + $0x80] sm:$0xff] %v4626_v53  ;;  %v4628_v61 = vadd.f32 %v2962_v59, %v5305_v29  ;;  %v2964_v63 = vpop.f32.mrb[7].mxu0  ;;  %4062 = vst [vmem:[#allocation8 + $0x90] sm:$0xff] %v4658_v56  ;;  %v4660_v0 = vadd.f32 %v3301_v62, %v5308_v30  ;;  %v3303_v2 = vpop.f32.mrb[7].mxu1 }
 0x1da   :  { %4061 = vst [vmem:[#allocation8 + $0x88] sm:$0xff] %v4627_v57  ;;  %v4629_v1 = vadd.f32 %v2964_v63, %v5311_v31  ;;  %4063 = vst [vmem:[#allocation8 + $0x98] sm:$0xff] %v4659_v60  ;;  %v4661_v3 = vadd.f32 %v3303_v2, %v5314_v33 }
 0x1db   :  { %4068 = vst [vmem:[#allocation8 + $0xc0] sm:$0xff] %v4628_v61  ;;  %3665 = vmatmul.mubr.bf16.gmra.mrb[48].mxu0 %v5129_v4  ;;  %4070 = vst [vmem:[#allocation8 + $0xd0] sm:$0xff] %v4660_v0  ;;  %4004 = vmatmul.mubr.bf16.gmra.mrb[48].mxu1 %v5129_v4  ;;  %v5135_v0 = vld [vmem:[#allocation2 + $0x160] ss:$24 sps:$4 sm:$0xff]  }
 0x1dc   :  { %4069 = vst [vmem:[#allocation8 + $0xc8] sm:$0xff] %v4629_v1  ;;  %3674 = vmatprep.mubr.bf16.mxu0 %v5130_v5  ;;  %4071 = vst [vmem:[#allocation8 + $0xd8] sm:$0xff] %v4661_v3  ;;  %4013 = vmatprep.mubr.bf16.mxu1 %v5130_v5 }
 0x1de   :  { %v2968_v6 = vpop.f32.mrb[8].mxu0  ;;  %v3307_v8 = vpop.f32.mrb[8].mxu1 }
 0x1df   :  { %v4630_v7 = vadd.f32 %v2968_v6, %v5305_v29  ;;  %v2970_v9 = vpop.f32.mrb[9].mxu0  ;;  %v4662_v10 = vadd.f32 %v3307_v8, %v5308_v30  ;;  %v3309_v12 = vpop.f32.mrb[9].mxu1 }
 0x1e0   :  { %v4631_v11 = vadd.f32 %v2970_v9, %v5311_v31  ;;  %v2972_v13 = vpop.f32.mrb[10].mxu0  ;;  %v4663_v14 = vadd.f32 %v3309_v12, %v5314_v33  ;;  %v3311_v16 = vpop.f32.mrb[10].mxu1 }
 0x1e1   :  { %4076 = vst [vmem:[#allocation8 + $0x100] sm:$0xff] %v4630_v7  ;;  %v4632_v15 = vadd.f32 %v2972_v13, %v5305_v29  ;;  %v2974_v17 = vpop.f32.mrb[11].mxu0  ;;  %4078 = vst [vmem:[#allocation8 + $0x110] sm:$0xff] %v4662_v10  ;;  %v4664_v18 = vadd.f32 %v3311_v16, %v5308_v30  ;;  %v3313_v20 = vpop.f32.mrb[11].mxu1 }
 0x1e2   :  { %4077 = vst [vmem:[#allocation8 + $0x108] sm:$0xff] %v4631_v11  ;;  %v4633_v19 = vadd.f32 %v2974_v17, %v5311_v31  ;;  %4079 = vst [vmem:[#allocation8 + $0x118] sm:$0xff] %v4663_v14  ;;  %v4665_v22 = vadd.f32 %v3313_v20, %v5314_v33 }
 0x1e3   :  { %4084 = vst [vmem:[#allocation8 + $0x140] sm:$0xff] %v4632_v15  ;;  %3675 = vmatmul.mubr.bf16.gmra.mrb[52].mxu0 %v5131_v23  ;;  %4086 = vst [vmem:[#allocation8 + $0x150] sm:$0xff] %v4664_v18  ;;  %4014 = vmatmul.mubr.bf16.gmra.mrb[52].mxu1 %v5131_v23 }
 0x1e4   :  { %4085 = vst [vmem:[#allocation8 + $0x148] sm:$0xff] %v4633_v19  ;;  %3684 = vmatprep.mubr.bf16.mxu0 %v5132_v25  ;;  %4087 = vst [vmem:[#allocation8 + $0x158] sm:$0xff] %v4665_v22  ;;  %4023 = vmatprep.mubr.bf16.mxu1 %v5132_v25 }
 0x1e6   :  { %v2978_v26 = vpop.f32.mrb[12].mxu0  ;;  %v3317_v28 = vpop.f32.mrb[12].mxu1 }
 0x1e7   :  { %v4634_v27 = vadd.f32 %v2978_v26, %v5305_v29  ;;  %v2980_v32 = vpop.f32.mrb[13].mxu0  ;;  %v4666_v34 = vadd.f32 %v3317_v28, %v5308_v30  ;;  %v3319_v36 = vpop.f32.mrb[13].mxu1 }
 0x1e8   :  { %v4635_v35 = vadd.f32 %v2980_v32, %v5311_v31  ;;  %v2982_v37 = vpop.f32.mrb[14].mxu0  ;;  %v4667_v38 = vadd.f32 %v3319_v36, %v5314_v33  ;;  %v3321_v40 = vpop.f32.mrb[14].mxu1 }
 0x1e9   :  { %4092 = vst [vmem:[#allocation8 + $0x180] sm:$0xff] %v4634_v27  ;;  %v4636_v39 = vadd.f32 %v2982_v37, %v5305_v29  ;;  %v2984_v41 = vpop.f32.mrb[15].mxu0  ;;  %4094 = vst [vmem:[#allocation8 + $0x190] sm:$0xff] %v4666_v34  ;;  %v4668_v42 = vadd.f32 %v3321_v40, %v5308_v30  ;;  %v3323_v44 = vpop.f32.mrb[15].mxu1 }
 0x1ea   :  { %4093 = vst [vmem:[#allocation8 + $0x188] sm:$0xff] %v4635_v35  ;;  %v4637_v43 = vadd.f32 %v2984_v41, %v5311_v31  ;;  %4095 = vst [vmem:[#allocation8 + $0x198] sm:$0xff] %v4667_v38  ;;  %v4669_v45 = vadd.f32 %v3323_v44, %v5314_v33 }
 0x1eb   :  { %4100 = vst [vmem:[#allocation8 + $0x1c0] sm:$0xff] %v4636_v39  ;;  %3685 = vmatmul.mubr.bf16.gmra.mrb[56].mxu0 %v5133_v46  ;;  %4102 = vst [vmem:[#allocation8 + $0x1d0] sm:$0xff] %v4668_v42  ;;  %4024 = vmatmul.mubr.bf16.gmra.mrb[56].mxu1 %v5133_v46 }
 0x1ec   :  { %4101 = vst [vmem:[#allocation8 + $0x1c8] sm:$0xff] %v4637_v43  ;;  %3694 = vmatprep.mubr.bf16.mxu0 %v5134_v47  ;;  %4103 = vst [vmem:[#allocation8 + $0x1d8] sm:$0xff] %v4669_v45  ;;  %4033 = vmatprep.mubr.bf16.mxu1 %v5134_v47 }
 0x1ee   :  { %v2988_v48 = vpop.f32.mrb[16].mxu0  ;;  %v3327_v50 = vpop.f32.mrb[16].mxu1 }
 0x1ef   :  { %v4638_v49 = vadd.f32 %v2988_v48, %v5305_v29  ;;  %v2990_v51 = vpop.f32.mrb[17].mxu0  ;;  %v4670_v52 = vadd.f32 %v3327_v50, %v5308_v30  ;;  %v3329_v54 = vpop.f32.mrb[17].mxu1 }
 0x1f0   :  { %v4639_v53 = vadd.f32 %v2990_v51, %v5311_v31  ;;  %v2992_v55 = vpop.f32.mrb[18].mxu0  ;;  %v4671_v56 = vadd.f32 %v3329_v54, %v5314_v33  ;;  %v3331_v58 = vpop.f32.mrb[18].mxu1 }
 0x1f1   :  { %4108 = vst [vmem:[#allocation8 + $0x200] sm:$0xff] %v4638_v49  ;;  %v4640_v57 = vadd.f32 %v2992_v55, %v5305_v29  ;;  %v2994_v59 = vpop.f32.mrb[19].mxu0  ;;  %4110 = vst [vmem:[#allocation8 + $0x210] sm:$0xff] %v4670_v52  ;;  %v4672_v60 = vadd.f32 %v3331_v58, %v5308_v30  ;;  %v3333_v62 = vpop.f32.mrb[19].mxu1  ;;  %v506_v55 = vsub.s32 4, %v5296_v21 }
 0x1f2   :  { %4109 = vst [vmem:[#allocation8 + $0x208] sm:$0xff] %v4639_v53  ;;  %v4641_v61 = vadd.f32 %v2994_v59, %v5311_v31  ;;  %4111 = vst [vmem:[#allocation8 + $0x218] sm:$0xff] %v4671_v56  ;;  %v4673_v63 = vadd.f32 %v3333_v62, %v5314_v33  ;;  %v510_v56 = vsub.s32 5, %v5296_v21 }
 0x1f3   :  { %4116 = vst [vmem:[#allocation8 + $0x240] sm:$0xff] %v4640_v57  ;;  %3695 = vmatmul.mubr.bf16.gmra.mrb[60].mxu0 %v5135_v0  ;;  %4118 = vst [vmem:[#allocation8 + $0x250] sm:$0xff] %v4672_v60  ;;  %4034 = vmatmul.mubr.bf16.gmra.mrb[60].mxu1 %v5135_v0  ;;  %v518_v57 = vsub.s32 7, %v5296_v21 }
 0x1f4   :  { %4117 = vst [vmem:[#allocation8 + $0x248] sm:$0xff] %v4641_v61  ;;  %4119 = vst [vmem:[#allocation8 + $0x258] sm:$0xff] %v4673_v63  ;;  %v5391_v58 = vrot.slane %v5299_v24, %v510_v56 }
 0x1f6   :  { %v2998_v1 = vpop.f32.mrb[20].mxu0  ;;  %v3337_v3 = vpop.f32.mrb[20].mxu1 }
 0x1f7   :  { %v4642_v2 = vadd.f32 %v2998_v1, %v5305_v29  ;;  %v3000_v4 = vpop.f32.mrb[21].mxu0  ;;  %v4674_v5 = vadd.f32 %v3337_v3, %v5308_v30  ;;  %v3339_v7 = vpop.f32.mrb[21].mxu1 }
 0x1f8   :  { %v4643_v6 = vadd.f32 %v3000_v4, %v5311_v31  ;;  %v3002_v8 = vpop.f32.mrb[22].mxu0  ;;  %v4675_v9 = vadd.f32 %v3339_v7, %v5314_v33  ;;  %v3341_v11 = vpop.f32.mrb[22].mxu1 }
 0x1f9   :  { %4124 = vst [vmem:[#allocation8 + $0x280] sm:$0xff] %v4642_v2  ;;  %v4644_v10 = vadd.f32 %v3002_v8, %v5305_v29  ;;  %v3004_v12 = vpop.f32.mrb[23].mxu0  ;;  %4126 = vst [vmem:[#allocation8 + $0x290] sm:$0xff] %v4674_v5  ;;  %v4676_v13 = vadd.f32 %v3341_v11, %v5308_v30  ;;  %v3343_v15 = vpop.f32.mrb[23].mxu1 }
 0x1fa   :  { %4125 = vst [vmem:[#allocation8 + $0x288] sm:$0xff] %v4643_v6  ;;  %v4645_v14 = vadd.f32 %v3004_v12, %v5311_v31  ;;  %4127 = vst [vmem:[#allocation8 + $0x298] sm:$0xff] %v4675_v9  ;;  %v4677_v16 = vadd.f32 %v3343_v15, %v5314_v33 }
 0x1fb   :  { %4132 = vst [vmem:[#allocation8 + $0x2c0] sm:$0xff] %v4644_v10  ;;  %4134 = vst [vmem:[#allocation8 + $0x2d0] sm:$0xff] %v4676_v13 }
 0x1fc   :  { %4133 = vst [vmem:[#allocation8 + $0x2c8] sm:$0xff] %v4645_v14  ;;  %4135 = vst [vmem:[#allocation8 + $0x2d8] sm:$0xff] %v4677_v16 }
 0x1fe   :  { %v3008_v17 = vpop.f32.mrb[24].mxu0  ;;  %v3347_v19 = vpop.f32.mrb[24].mxu1 }
 0x1ff   :  { %v4646_v18 = vadd.f32 %v3008_v17, %v5305_v29  ;;  %v3010_v20 = vpop.f32.mrb[25].mxu0  ;;  %v4678_v22 = vadd.f32 %v3347_v19, %v5308_v30  ;;  %v3349_v25 = vpop.f32.mrb[25].mxu1 }
 0x200   :  { %v4647_v23 = vadd.f32 %v3010_v20, %v5311_v31  ;;  %v3012_v26 = vpop.f32.mrb[26].mxu0  ;;  %v4679_v27 = vadd.f32 %v3349_v25, %v5314_v33  ;;  %v3351_v32 = vpop.f32.mrb[26].mxu1 }
 0x201   :  { %4140 = vst [vmem:[#allocation8 + $0x300] sm:$0xff] %v4646_v18  ;;  %v4648_v28 = vadd.f32 %v3012_v26, %v5305_v29  ;;  %v3014_v34 = vpop.f32.mrb[27].mxu0  ;;  %4142 = vst [vmem:[#allocation8 + $0x310] sm:$0xff] %v4678_v22  ;;  %v4680_v35 = vadd.f32 %v3351_v32, %v5308_v30  ;;  %v3353_v37 = vpop.f32.mrb[27].mxu1 }
 0x202   :  { %4141 = vst [vmem:[#allocation8 + $0x308] sm:$0xff] %v4647_v23  ;;  %v4649_v36 = vadd.f32 %v3014_v34, %v5311_v31  ;;  %4143 = vst [vmem:[#allocation8 + $0x318] sm:$0xff] %v4679_v27  ;;  %v4681_v38 = vadd.f32 %v3353_v37, %v5314_v33 }
 0x203   :  { %4148 = vst [vmem:[#allocation8 + $0x340] sm:$0xff] %v4648_v28  ;;  %4150 = vst [vmem:[#allocation8 + $0x350] sm:$0xff] %v4680_v35 }
 0x204   :  { %4149 = vst [vmem:[#allocation8 + $0x348] sm:$0xff] %v4649_v36  ;;  %4151 = vst [vmem:[#allocation8 + $0x358] sm:$0xff] %v4681_v38 }
 0x206   :  { %v3018_v39 = vpop.f32.mrb[28].mxu0  ;;  %v3357_v41 = vpop.f32.mrb[28].mxu1 }
 0x207   :  { %v4650_v40 = vadd.f32 %v3018_v39, %v5305_v29  ;;  %v3020_v42 = vpop.f32.mrb[29].mxu0  ;;  %v4682_v43 = vadd.f32 %v3357_v41, %v5308_v30  ;;  %v3359_v45 = vpop.f32.mrb[29].mxu1 }
 0x208   :  { %v4651_v44 = vadd.f32 %v3020_v42, %v5311_v31  ;;  %v3022_v46 = vpop.f32.mrb[30].mxu0  ;;  %v4683_v47 = vadd.f32 %v3359_v45, %v5314_v33  ;;  %v3361_v49 = vpop.f32.mrb[30].mxu1 }
 0x209   :  { %4156 = vst [vmem:[#allocation8 + $0x380] sm:$0xff] %v4650_v40  ;;  %v4652_v48 = vadd.f32 %v3022_v46, %v5305_v29  ;;  %v3024_v50 = vpop.f32.mrb[31].mxu0  ;;  %4158 = vst [vmem:[#allocation8 + $0x390] sm:$0xff] %v4682_v43  ;;  %v4684_v51 = vadd.f32 %v3361_v49, %v5308_v30  ;;  %v3363_v53 = vpop.f32.mrb[31].mxu1  ;;  %v514_v29 = vsub.s32 6, %v5296_v21  ;;  %v5385_v30 = vrot.slane %v5299_v24, %v506_v55 }
 0x20a   :  { %4157 = vst [vmem:[#allocation8 + $0x388] sm:$0xff] %v4651_v44  ;;  %v4653_v52 = vadd.f32 %v3024_v50, %v5311_v31  ;;  %4159 = vst [vmem:[#allocation8 + $0x398] sm:$0xff] %v4683_v47  ;;  %v4685_v54 = vadd.f32 %v3363_v53, %v5314_v33  ;;  %v5394_v33 = vrot.slane %v5299_v24, %v518_v57 }
 0x20b   :  { %4164 = vst [vmem:[#allocation8 + $0x3c0] sm:$0xff] %v4652_v48  ;;  %4166 = vst [vmem:[#allocation8 + $0x3d0] sm:$0xff] %v4684_v51  ;;  %v5388_v31 = vrot.slane %v5299_v24, %v514_v29 }
 0x20c   :  { %4165 = vst [vmem:[#allocation8 + $0x3c8] sm:$0xff] %v4653_v52  ;;  %4167 = vst [vmem:[#allocation8 + $0x3d8] sm:$0xff] %v4685_v54 }
 0x28e   :  { %v3626_v59 = vpop.f32.mrb[32].mxu0  ;;  %v3965_v61 = vpop.f32.mrb[32].mxu1 }
 0x28f   :  { %v4686_v60 = vadd.f32 %v3626_v59, %v5385_v30  ;;  %v3628_v62 = vpop.f32.mrb[33].mxu0  ;;  %v4718_v63 = vadd.f32 %v3965_v61, %v5388_v31  ;;  %v3967_v0 = vpop.f32.mrb[33].mxu1 }
 0x290   :  { %v4687_v21 = vadd.f32 %v3628_v62, %v5391_v58  ;;  %v3630_v1 = vpop.f32.mrb[34].mxu0  ;;  %v4719_v2 = vadd.f32 %v3967_v0, %v5394_v33  ;;  %v3969_v4 = vpop.f32.mrb[34].mxu1 }
 0x291   :  { %4048 = vst [vmem:[#allocation8 + $0x20] sm:$0xff] %v4686_v60  ;;  %v4688_v3 = vadd.f32 %v3630_v1, %v5385_v30  ;;  %v3632_v5 = vpop.f32.mrb[35].mxu0  ;;  %4050 = vst [vmem:[#allocation8 + $0x30] sm:$0xff] %v4718_v63  ;;  %v4720_v24 = vadd.f32 %v3969_v4, %v5388_v31  ;;  %v3971_v7 = vpop.f32.mrb[35].mxu1 }
 0x292   :  { %4049 = vst [vmem:[#allocation8 + $0x28] sm:$0xff] %v4687_v21  ;;  %v4689_v6 = vadd.f32 %v3632_v5, %v5391_v58  ;;  %4051 = vst [vmem:[#allocation8 + $0x38] sm:$0xff] %v4719_v2  ;;  %v4721_v8 = vadd.f32 %v3971_v7, %v5394_v33 }
 0x293   :  { %4056 = vst [vmem:[#allocation8 + $0x60] sm:$0xff] %v4688_v3  ;;  %4058 = vst [vmem:[#allocation8 + $0x70] sm:$0xff] %v4720_v24 }
 0x294   :  { %4057 = vst [vmem:[#allocation8 + $0x68] sm:$0xff] %v4689_v6  ;;  %4059 = vst [vmem:[#allocation8 + $0x78] sm:$0xff] %v4721_v8 }
 0x296   :  { %v3636_v9 = vpop.f32.mrb[36].mxu0  ;;  %v3975_v11 = vpop.f32.mrb[36].mxu1 }
 0x297   :  { %v4690_v10 = vadd.f32 %v3636_v9, %v5385_v30  ;;  %v3638_v12 = vpop.f32.mrb[37].mxu0  ;;  %v4722_v13 = vadd.f32 %v3975_v11, %v5388_v31  ;;  %v3977_v15 = vpop.f32.mrb[37].mxu1 }
 0x298   :  { %v4691_v14 = vadd.f32 %v3638_v12, %v5391_v58  ;;  %v3640_v16 = vpop.f32.mrb[38].mxu0  ;;  %v4723_v17 = vadd.f32 %v3977_v15, %v5394_v33  ;;  %v3979_v19 = vpop.f32.mrb[38].mxu1 }
 0x299   :  { %4064 = vst [vmem:[#allocation8 + $0xa0] sm:$0xff] %v4690_v10  ;;  %v4692_v18 = vadd.f32 %v3640_v16, %v5385_v30  ;;  %v3642_v20 = vpop.f32.mrb[39].mxu0  ;;  %4066 = vst [vmem:[#allocation8 + $0xb0] sm:$0xff] %v4722_v13  ;;  %v4724_v22 = vadd.f32 %v3979_v19, %v5388_v31  ;;  %v3981_v25 = vpop.f32.mrb[39].mxu1 }
 0x29a   :  { %4065 = vst [vmem:[#allocation8 + $0xa8] sm:$0xff] %v4691_v14  ;;  %v4693_v23 = vadd.f32 %v3642_v20, %v5391_v58  ;;  %4067 = vst [vmem:[#allocation8 + $0xb8] sm:$0xff] %v4723_v17  ;;  %v4725_v26 = vadd.f32 %v3981_v25, %v5394_v33 }
 0x29b   :  { %4072 = vst [vmem:[#allocation8 + $0xe0] sm:$0xff] %v4692_v18  ;;  %4074 = vst [vmem:[#allocation8 + $0xf0] sm:$0xff] %v4724_v22 }
 0x29c   :  { %4073 = vst [vmem:[#allocation8 + $0xe8] sm:$0xff] %v4693_v23  ;;  %4075 = vst [vmem:[#allocation8 + $0xf8] sm:$0xff] %v4725_v26 }
 0x29e   :  { %v3646_v27 = vpop.f32.mrb[40].mxu0  ;;  %v3985_v32 = vpop.f32.mrb[40].mxu1 }
 0x29f   :  { %v4694_v28 = vadd.f32 %v3646_v27, %v5385_v30  ;;  %v3648_v34 = vpop.f32.mrb[41].mxu0  ;;  %v4726_v35 = vadd.f32 %v3985_v32, %v5388_v31  ;;  %v3987_v37 = vpop.f32.mrb[41].mxu1 }
 0x2a0   :  { %v4695_v36 = vadd.f32 %v3648_v34, %v5391_v58  ;;  %v3650_v38 = vpop.f32.mrb[42].mxu0  ;;  %v4727_v39 = vadd.f32 %v3987_v37, %v5394_v33  ;;  %v3989_v41 = vpop.f32.mrb[42].mxu1 }
 0x2a1   :  { %4080 = vst [vmem:[#allocation8 + $0x120] sm:$0xff] %v4694_v28  ;;  %v4696_v40 = vadd.f32 %v3650_v38, %v5385_v30  ;;  %v3652_v42 = vpop.f32.mrb[43].mxu0  ;;  %4082 = vst [vmem:[#allocation8 + $0x130] sm:$0xff] %v4726_v35  ;;  %v4728_v43 = vadd.f32 %v3989_v41, %v5388_v31  ;;  %v3991_v45 = vpop.f32.mrb[43].mxu1 }
 0x2a2   :  { %4081 = vst [vmem:[#allocation8 + $0x128] sm:$0xff] %v4695_v36  ;;  %v4697_v44 = vadd.f32 %v3652_v42, %v5391_v58  ;;  %4083 = vst [vmem:[#allocation8 + $0x138] sm:$0xff] %v4727_v39  ;;  %v4729_v46 = vadd.f32 %v3991_v45, %v5394_v33 }
 0x2a3   :  { %4088 = vst [vmem:[#allocation8 + $0x160] sm:$0xff] %v4696_v40  ;;  %4090 = vst [vmem:[#allocation8 + $0x170] sm:$0xff] %v4728_v43 }
 0x2a4   :  { %4089 = vst [vmem:[#allocation8 + $0x168] sm:$0xff] %v4697_v44  ;;  %4091 = vst [vmem:[#allocation8 + $0x178] sm:$0xff] %v4729_v46 }
 0x2a6   :  { %v3656_v47 = vpop.f32.mrb[44].mxu0  ;;  %v3995_v49 = vpop.f32.mrb[44].mxu1 }
 0x2a7   :  { %v4698_v48 = vadd.f32 %v3656_v47, %v5385_v30  ;;  %v3658_v50 = vpop.f32.mrb[45].mxu0  ;;  %v4730_v51 = vadd.f32 %v3995_v49, %v5388_v31  ;;  %v3997_v53 = vpop.f32.mrb[45].mxu1 }
 0x2a8   :  { %v4699_v52 = vadd.f32 %v3658_v50, %v5391_v58  ;;  %v3660_v54 = vpop.f32.mrb[46].mxu0  ;;  %v4731_v55 = vadd.f32 %v3997_v53, %v5394_v33  ;;  %v3999_v56 = vpop.f32.mrb[46].mxu1 }
 0x2a9   :  { %4096 = vst [vmem:[#allocation8 + $0x1a0] sm:$0xff] %v4698_v48  ;;  %v4700_v29 = vadd.f32 %v3660_v54, %v5385_v30  ;;  %v3662_v57 = vpop.f32.mrb[47].mxu0  ;;  %4098 = vst [vmem:[#allocation8 + $0x1b0] sm:$0xff] %v4730_v51  ;;  %v4732_v59 = vadd.f32 %v3999_v56, %v5388_v31  ;;  %v4001_v61 = vpop.f32.mrb[47].mxu1 }
 0x2aa   :  { %4097 = vst [vmem:[#allocation8 + $0x1a8] sm:$0xff] %v4699_v52  ;;  %v4701_v60 = vadd.f32 %v3662_v57, %v5391_v58  ;;  %4099 = vst [vmem:[#allocation8 + $0x1b8] sm:$0xff] %v4731_v55  ;;  %v4733_v62 = vadd.f32 %v4001_v61, %v5394_v33 }
 0x2ab   :  { %4104 = vst [vmem:[#allocation8 + $0x1e0] sm:$0xff] %v4700_v29  ;;  %4106 = vst [vmem:[#allocation8 + $0x1f0] sm:$0xff] %v4732_v59 }
 0x2ac   :  { %4105 = vst [vmem:[#allocation8 + $0x1e8] sm:$0xff] %v4701_v60  ;;  %4107 = vst [vmem:[#allocation8 + $0x1f8] sm:$0xff] %v4733_v62 }
 0x2ae   :  { %v3666_v63 = vpop.f32.mrb[48].mxu0  ;;  %v4005_v0 = vpop.f32.mrb[48].mxu1 }
 0x2af   :  { %v4702_v21 = vadd.f32 %v3666_v63, %v5385_v30  ;;  %v3668_v1 = vpop.f32.mrb[49].mxu0  ;;  %v4734_v2 = vadd.f32 %v4005_v0, %v5388_v31  ;;  %v4007_v4 = vpop.f32.mrb[49].mxu1 }
 0x2b0   :  { %v4703_v3 = vadd.f32 %v3668_v1, %v5391_v58  ;;  %v3670_v5 = vpop.f32.mrb[50].mxu0  ;;  %v4735_v24 = vadd.f32 %v4007_v4, %v5394_v33  ;;  %v4009_v7 = vpop.f32.mrb[50].mxu1 }
 0x2b1   :  { %4112 = vst [vmem:[#allocation8 + $0x220] sm:$0xff] %v4702_v21  ;;  %v4704_v6 = vadd.f32 %v3670_v5, %v5385_v30  ;;  %v3672_v8 = vpop.f32.mrb[51].mxu0  ;;  %4114 = vst [vmem:[#allocation8 + $0x230] sm:$0xff] %v4734_v2  ;;  %v4736_v9 = vadd.f32 %v4009_v7, %v5388_v31  ;;  %v4011_v11 = vpop.f32.mrb[51].mxu1 }
 0x2b2   :  { %4113 = vst [vmem:[#allocation8 + $0x228] sm:$0xff] %v4703_v3  ;;  %v4705_v10 = vadd.f32 %v3672_v8, %v5391_v58  ;;  %4115 = vst [vmem:[#allocation8 + $0x238] sm:$0xff] %v4735_v24  ;;  %v4737_v12 = vadd.f32 %v4011_v11, %v5394_v33 }
 0x2b3   :  { %4120 = vst [vmem:[#allocation8 + $0x260] sm:$0xff] %v4704_v6  ;;  %4122 = vst [vmem:[#allocation8 + $0x270] sm:$0xff] %v4736_v9 }
 0x2b4   :  { %4121 = vst [vmem:[#allocation8 + $0x268] sm:$0xff] %v4705_v10  ;;  %4123 = vst [vmem:[#allocation8 + $0x278] sm:$0xff] %v4737_v12 }
 0x2b6   :  { %v3676_v13 = vpop.f32.mrb[52].mxu0  ;;  %v4015_v15 = vpop.f32.mrb[52].mxu1 }
 0x2b7   :  { %v4706_v14 = vadd.f32 %v3676_v13, %v5385_v30  ;;  %v3678_v16 = vpop.f32.mrb[53].mxu0  ;;  %v4738_v17 = vadd.f32 %v4015_v15, %v5388_v31  ;;  %v4017_v19 = vpop.f32.mrb[53].mxu1 }
 0x2b8   :  { %v4707_v18 = vadd.f32 %v3678_v16, %v5391_v58  ;;  %v3680_v20 = vpop.f32.mrb[54].mxu0  ;;  %v4739_v22 = vadd.f32 %v4017_v19, %v5394_v33  ;;  %v4019_v25 = vpop.f32.mrb[54].mxu1 }
 0x2b9   :  { %4128 = vst [vmem:[#allocation8 + $0x2a0] sm:$0xff] %v4706_v14  ;;  %v4708_v23 = vadd.f32 %v3680_v20, %v5385_v30  ;;  %v3682_v26 = vpop.f32.mrb[55].mxu0  ;;  %4130 = vst [vmem:[#allocation8 + $0x2b0] sm:$0xff] %v4738_v17  ;;  %v4740_v27 = vadd.f32 %v4019_v25, %v5388_v31  ;;  %v4021_v32 = vpop.f32.mrb[55].mxu1 }
 0x2ba   :  { %4129 = vst [vmem:[#allocation8 + $0x2a8] sm:$0xff] %v4707_v18  ;;  %v4709_v28 = vadd.f32 %v3682_v26, %v5391_v58  ;;  %4131 = vst [vmem:[#allocation8 + $0x2b8] sm:$0xff] %v4739_v22  ;;  %v4741_v34 = vadd.f32 %v4021_v32, %v5394_v33 }
 0x2bb   :  { %4136 = vst [vmem:[#allocation8 + $0x2e0] sm:$0xff] %v4708_v23  ;;  %4138 = vst [vmem:[#allocation8 + $0x2f0] sm:$0xff] %v4740_v27 }
 0x2bc   :  { %4137 = vst [vmem:[#allocation8 + $0x2e8] sm:$0xff] %v4709_v28  ;;  %4139 = vst [vmem:[#allocation8 + $0x2f8] sm:$0xff] %v4741_v34 }
 0x2be   :  { %v3686_v35 = vpop.f32.mrb[56].mxu0  ;;  %v4025_v37 = vpop.f32.mrb[56].mxu1 }
 0x2bf   :  { %v4710_v36 = vadd.f32 %v3686_v35, %v5385_v30  ;;  %v3688_v38 = vpop.f32.mrb[57].mxu0  ;;  %v4742_v39 = vadd.f32 %v4025_v37, %v5388_v31  ;;  %v4027_v41 = vpop.f32.mrb[57].mxu1 }
 0x2c0   :  { %v4711_v40 = vadd.f32 %v3688_v38, %v5391_v58  ;;  %v3690_v42 = vpop.f32.mrb[58].mxu0  ;;  %v4743_v43 = vadd.f32 %v4027_v41, %v5394_v33  ;;  %v4029_v45 = vpop.f32.mrb[58].mxu1 }
 0x2c1   :  { %4144 = vst [vmem:[#allocation8 + $0x320] sm:$0xff] %v4710_v36  ;;  %v4712_v44 = vadd.f32 %v3690_v42, %v5385_v30  ;;  %v3692_v46 = vpop.f32.mrb[59].mxu0  ;;  %4146 = vst [vmem:[#allocation8 + $0x330] sm:$0xff] %v4742_v39  ;;  %v4744_v47 = vadd.f32 %v4029_v45, %v5388_v31  ;;  %v4031_v49 = vpop.f32.mrb[59].mxu1 }
 0x2c2   :  { %4145 = vst [vmem:[#allocation8 + $0x328] sm:$0xff] %v4711_v40  ;;  %v4713_v48 = vadd.f32 %v3692_v46, %v5391_v58  ;;  %4147 = vst [vmem:[#allocation8 + $0x338] sm:$0xff] %v4743_v43  ;;  %v4745_v50 = vadd.f32 %v4031_v49, %v5394_v33 }
 0x2c3   :  { %4152 = vst [vmem:[#allocation8 + $0x360] sm:$0xff] %v4712_v44  ;;  %4154 = vst [vmem:[#allocation8 + $0x370] sm:$0xff] %v4744_v47 }
 0x2c4   :  { %4153 = vst [vmem:[#allocation8 + $0x368] sm:$0xff] %v4713_v48  ;;  %4155 = vst [vmem:[#allocation8 + $0x378] sm:$0xff] %v4745_v50 }
 0x2c6   :  { %v3696_v51 = vpop.f32.mrb[60].mxu0  ;;  %v4035_v53 = vpop.f32.mrb[60].mxu1 }
 0x2c7   :  { %v4714_v52 = vadd.f32 %v3696_v51, %v5385_v30  ;;  %v3698_v54 = vpop.f32.mrb[61].mxu0  ;;  %v4746_v55 = vadd.f32 %v4035_v53, %v5388_v31  ;;  %v4037_v56 = vpop.f32.mrb[61].mxu1 }
 0x2c8   :  { %v4715_v29 = vadd.f32 %v3698_v54, %v5391_v58  ;;  %v3700_v57 = vpop.f32.mrb[62].mxu0  ;;  %v4747_v59 = vadd.f32 %v4037_v56, %v5394_v33  ;;  %v4039_v61 = vpop.f32.mrb[62].mxu1 }
 0x2c9   :  { %4160 = vst [vmem:[#allocation8 + $0x3a0] sm:$0xff] %v4714_v52  ;;  %v4716_v60 = vadd.f32 %v3700_v57, %v5385_v30  ;;  %v3702_v62 = vpop.f32.mrb[63].mxu0  ;;  %4162 = vst [vmem:[#allocation8 + $0x3b0] sm:$0xff] %v4746_v55  ;;  %v4748_v63 = vadd.f32 %v4039_v61, %v5388_v31  ;;  %v4041_v0 = vpop.f32.mrb[63].mxu1 }
 0x2ca   :  { %4161 = vst [vmem:[#allocation8 + $0x3a8] sm:$0xff] %v4715_v29  ;;  %v4717_v21 = vadd.f32 %v3702_v62, %v5391_v58  ;;  %4163 = vst [vmem:[#allocation8 + $0x3b8] sm:$0xff] %v4747_v59  ;;  %v4749_v1 = vadd.f32 %v4041_v0, %v5394_v33 }
 0x2cb   :  { %4168 = vst [vmem:[#allocation8 + $0x3e0] sm:$0xff] %v4716_v60  ;;  %4170 = vst [vmem:[#allocation8 + $0x3f0] sm:$0xff] %v4748_v63 }
 0x2cc   :  { %4169 = vst [vmem:[#allocation8 + $0x3e8] sm:$0xff] %v4717_v21  ;;  %4171 = vst [vmem:[#allocation8 + $0x3f8] sm:$0xff] %v4749_v1 }
 0x2cd   :  { %5213 = shalt.err (!%p5210_p0)
}
 0x2ce   :  { %s5214_s27 = scalar_lea.hbm %s5475_s3, 16384 }
 0x2cf   :  { %p5215_p1 = scmp.ne.s32.totalorder %s5475_s3, %s5214_s27  ;;  %p5218_p2 = scmp.lt.u32.totalorder %s5214_s27, %s5475_s3 }
 0x2d1   :  { %p5220_p3 = pnand %p5218_p2, %p5215_p1 }
 0x2d3   :  { %5223 = shalt.err (!%p5220_p3)
}
 0x2d4   :  { %s5238_s5 = smov 1024   ;;  %s5239_s6 = smov 64  }
 0x2d5   :  { %4183 = dma.vmem_to_hbm [thread:$0]  %s4178_s23, 16384, %s5475_s3, [#allocation4], %s5238_s5, %s5238_s5, %s5239_s6  }
 0x2d6   :  { %5228 = dma.done.wait [#allocation4], 16384  }
 0x2d7   :  { %5229 = vsyncadd [#allocation4], 4294950912 }
 0x2d8   :  { %4187 = vsyncpa [#allocation3], 1 }
 0x2d9   :  { %4188 = vsyncpa [#allocation6], 1 }
 0x2da   :  { %4189 = vsyncpa [#allocation4], 1 }

</bundles_post_ra>
